<compile_context>
chip_gen: v7x
topology: tpu7x:2x2x1
jax: 0.10.0
libtpu: 0.0.40
codegen_flags: <defaults>
</compile_context>

<pallas_src>
import functools

import jax
import jax.numpy as jnp
from jax import lax
from jax.experimental import pallas as pl
from jax.experimental.pallas import tpu as pltpu

BN_EPS = 1e-5


def bottleneck_kernel(H, W,
                      x_ref, w1_ref, w2_ref, w3_ref,
                      g1_ref, b1_ref, g2_ref, b2_ref, g3_ref, b3_ref,
                      out_ref, col_ref):
    N, Cin, L = x_ref.shape            # L = H*W, lane-dense (multiple of 128)
    P = w1_ref.shape[0]                # planes
    Cout = w3_ref.shape[0]             # planes * expansion (== Cin here)
    inv_cnt = 1.0 / float(N * L)

    def bn_scale_shift(zs, g_ref, b_ref):
        # Training-mode BN over (N, H, W): one pass of sum + sum-of-squares
        # (f32, values O(1) -> no cancellation issue), fused apply as z*s + t.
        c = zs[0].shape[0]
        s = jnp.zeros((c, 1), jnp.float32)
        q = jnp.zeros((c, 1), jnp.float32)
        for z in zs:
            s = s + jnp.sum(z, axis=1, keepdims=True)
            q = q + jnp.sum(z * z, axis=1, keepdims=True)
        mean = s * inv_cnt
        var = q * inv_cnt - mean * mean              # biased variance
        scale = lax.rsqrt(var + BN_EPS) * g_ref[...]
        shift = b_ref[...] - mean * scale
        return scale, shift

    # ---- conv1 (1x1): (P, Cin) @ (Cin, L), bf16 operands, f32 accumulation ----
    z1 = [jnp.dot(w1_ref[...], x_ref[n].astype(jnp.bfloat16),
                  preferred_element_type=jnp.float32) for n in range(N)]
    sc1, sh1 = bn_scale_shift(z1, g1_ref, b1_ref)
    t1 = [jnp.maximum(z * sc1 + sh1, 0.0) for z in z1]          # (P, L) f32

    # ---- conv2 (3x3, stride=1, pad=1): im2col via lane rolls + masks ----------
    l_idx = lax.broadcasted_iota(jnp.int32, (1, L), 1)
    if W & (W - 1) == 0:                     # power-of-two W: cheap bit masking
        w_idx = jnp.bitwise_and(l_idx, W - 1)
    else:                                    # general fallback
        w_idx = l_idx % W

    taps = []   # (lane shift, f32 validity mask) in torch (ky, kx) tap order
    for ky in (-1, 0, 1):
        for kx in (-1, 0, 1):
            valid = l_idx >= 0                                   # all-true
            if ky < 0:
                valid = valid & (l_idx >= W)
            elif ky > 0:
                valid = valid & (l_idx < (H - 1) * W)
            if kx < 0:
                valid = valid & (w_idx >= 1)
            elif kx > 0:
                valid = valid & (w_idx <= W - 2)
            taps.append((ky * W + kx, valid.astype(jnp.float32)))

    z2 = []
    for n in range(N):
        # Build the (9P, L) im2col slab (f32), one fused matmul with K = 9P.
        for t, (dl, m) in enumerate(taps):
            src = t1[n] if dl == 0 else pltpu.roll(t1[n], shift=(-dl) % L, axis=1)
            col_ref[t * P:(t + 1) * P, :] = src * m
        z2.append(jnp.dot(w2_ref[...], col_ref[...].astype(jnp.bfloat16),
                          preferred_element_type=jnp.float32))
    sc2, sh2 = bn_scale_shift(z2, g2_ref, b2_ref)
    t2 = [jnp.maximum(z * sc2 + sh2, 0.0) for z in z2]           # (P, L) f32

    # ---- conv3 (1x1) + bn3 + residual + relu ----------------------------------
    z3 = [jnp.dot(w3_ref[...], t2[n].astype(jnp.bfloat16),
                  preferred_element_type=jnp.float32) for n in range(N)]
    sc3, sh3 = bn_scale_shift(z3, g3_ref, b3_ref)
    for n in range(N):
        o = z3[n] * sc3 + sh3 + x_ref[n]          # residual add (Cin == Cout)
        out_ref[n] = jnp.maximum(o, 0.0).astype(out_ref.dtype)   # (Cout, 256) dense store


def bottleneck_cc2(x_nchw, params):
    """x_nchw: (N, Cin, H, W) float32; returns (N, Cout, H, W) float32."""
    N, Cin, H, W = x_nchw.shape
    P = params["w1"].shape[1]
    Cout = params["w3"].shape[1]
    L = H * W

    # MXU operands pre-cast to bf16 (accumulation stays f32 in the kernel).
    w1k = params["w1"].T.astype(jnp.bfloat16)                               # (P, Cin)
    w2k = jnp.transpose(params["w2"], (3, 0, 1, 2)).reshape(P, 9 * P)
    w2k = w2k.astype(jnp.bfloat16)                                          # (P, 9P)
    w3k = params["w3"].T.astype(jnp.bfloat16)                               # (Cout, P)
    g1 = params["g1"].reshape(P, 1).astype(jnp.float32)
    b1 = params["b1"].reshape(P, 1).astype(jnp.float32)
    g2 = params["g2"].reshape(P, 1).astype(jnp.float32)
    b2 = params["b2"].reshape(P, 1).astype(jnp.float32)
    g3 = params["g3"].reshape(Cout, 1).astype(jnp.float32)
    b3 = params["b3"].reshape(Cout, 1).astype(jnp.float32)

    # Free reshape: channels on sublanes, H*W on lanes. No HBM transposes.
    x_k = x_nchw.reshape(N, Cin, L)

    out = pl.pallas_call(
        functools.partial(bottleneck_kernel, H, W),
        out_shape=jax.ShapeDtypeStruct((N, Cout, L), jnp.float32),
        in_specs=[pl.BlockSpec(memory_space=pltpu.MemorySpace.VMEM)] * 10,
        out_specs=pl.BlockSpec(memory_space=pltpu.MemorySpace.VMEM),
        scratch_shapes=[pltpu.VMEM((9 * P, L), jnp.float32)],   # im2col slab
        compiler_params=pltpu.CompilerParams(vmem_limit_bytes=32 * 1024 * 1024),
    )(x_k, w1k, w2k, w3k, g1, b1, g2, b2, g3, b3)

    return out.reshape(N, Cout, H, W)   # free reshape back to NCHW


# ----------------------------- pure-JAX reference -----------------------------
def _reference(x, params):
    def bn(z, g, b):
        mean = jnp.mean(z, axis=(0, 2, 3), keepdims=True)
        var = jnp.mean((z - mean) ** 2, axis=(0, 2, 3), keepdims=True)
        zn = (z - mean) / jnp.sqrt(var + BN_EPS)
        return zn * g.reshape(1, -1, 1, 1) + b.reshape(1, -1, 1, 1)

    dn = ("NCHW", "OIHW", "NCHW")
    w1 = params["w1"].T[:, :, None, None]                  # (P, Cin, 1, 1)
    w2 = jnp.transpose(params["w2"], (3, 2, 0, 1))         # (P, P, 3, 3)
    w3 = params["w3"].T[:, :, None, None]                  # (Cout, P, 1, 1)

    out = lax.conv_general_dilated(x, w1, (1, 1), "VALID",
                                   dimension_numbers=dn, precision="highest")
    out = jnp.maximum(bn(out, params["g1"], params["b1"]), 0.0)
    out = lax.conv_general_dilated(out, w2, (1, 1), ((1, 1), (1, 1)),
                                   dimension_numbers=dn, precision="highest")
    out = jnp.maximum(bn(out, params["g2"], params["b2"]), 0.0)
    out = lax.conv_general_dilated(out, w3, (1, 1), "VALID",
                                   dimension_numbers=dn, precision="highest")
    out = bn(out, params["g3"], params["b3"]) + x
    return jnp.maximum(out, 0.0)


if __name__ == "__main__":
    # Small shapes consistent with the module: inplanes = planes * expansion so
    # the (downsample=None) residual add is valid.
    N, H, W = 2, 16, 16
    planes = 4
    expansion = 4
    inplanes = planes * expansion            # 16

    key = jax.random.PRNGKey(0)
    k1, k2, k3, kx = jax.random.split(key, 4)
    params = {
        # conv1.weight (planes, inplanes, 1, 1) stored as (inplanes, planes)
        "w1": jax.random.normal(k1, (inplanes, planes), jnp.float32) * 0.1,
        # conv2.weight (planes, planes, 3, 3) stored HWIO as (3, 3, in, out)
        "w2": jax.random.normal(k2, (3, 3, planes, planes), jnp.float32) * 0.1,
        # conv3.weight (planes*4, planes, 1, 1) stored as (planes, planes*4)
        "w3": jax.random.normal(k3, (planes, planes * expansion), jnp.float32) * 0.1,
        # BatchNorm affine params (PyTorch default init: gamma=1, beta=0)
        "g1": jnp.ones((planes,), jnp.float32),
        "b1": jnp.zeros((planes,), jnp.float32),
        "g2": jnp.ones((planes,), jnp.float32),
        "b2": jnp.zeros((planes,), jnp.float32),
        "g3": jnp.ones((planes * expansion,), jnp.float32),
        "b3": jnp.zeros((planes * expansion,), jnp.float32),
    }

    x = jax.random.normal(kx, (N, inplanes, H, W), jnp.float32)

    out = jax.block_until_ready(bottleneck_cc2(x, params))
    ref = jax.block_until_ready(_reference(x, params))

    assert out.shape == (N, planes * expansion, H, W), out.shape
    # Kernel uses bf16 MXU operands (f32 accumulation); reference is f32/highest.
    err = float(jnp.max(jnp.abs(out - ref)))
    assert jnp.allclose(out, ref, rtol=5e-2, atol=5e-2), err

    print("KERNEL_OK")
</pallas_src>

<mosaic_0001>
module attributes {stable_mosaic.version = 11 : i64} {
  func.func @bottleneck_kernel(%arg0: memref<2x16x256xf32, #tpu.memory_space<vmem>>, %arg1: memref<4x16xbf16, #tpu.memory_space<vmem>>, %arg2: memref<4x36xbf16, #tpu.memory_space<vmem>>, %arg3: memref<16x4xbf16, #tpu.memory_space<vmem>>, %arg4: memref<4x1xf32, #tpu.memory_space<vmem>>, %arg5: memref<4x1xf32, #tpu.memory_space<vmem>>, %arg6: memref<4x1xf32, #tpu.memory_space<vmem>>, %arg7: memref<4x1xf32, #tpu.memory_space<vmem>>, %arg8: memref<16x1xf32, #tpu.memory_space<vmem>>, %arg9: memref<16x1xf32, #tpu.memory_space<vmem>>, %arg10: memref<2x16x256xf32, #tpu.memory_space<vmem>>, %arg11: memref<36x256xf32, #tpu.memory_space<vmem>>) attributes {dimension_semantics = [], scalar_prefetch = 0 : i64, scratch_operands = 1 : i64, tpu.core_type = #tpu.core_type<tc>} {
    %c0 = arith.constant 0 : index
    %c0_0 = arith.constant 0 : index
    %0 = vector.load %arg1[%c0, %c0_0] : memref<4x16xbf16, #tpu.memory_space<vmem>>, vector<4x16xbf16>
    %c0_1 = arith.constant 0 : index
    %c0_2 = arith.constant 0 : index
    %c0_3 = arith.constant 0 : index
    %1 = vector.load %arg0[%c0_1, %c0_2, %c0_3] : memref<2x16x256xf32, #tpu.memory_space<vmem>>, vector<1x16x256xf32>
    %2 = vector.shape_cast %1 : vector<1x16x256xf32> to vector<16x256xf32>
    %3 = arith.truncf %2 : vector<16x256xf32> to vector<16x256xbf16>
    %cst = arith.constant dense<0.000000e+00> : vector<4x256xf32>
    %4 = tpu.matmul %0, %3, %cst {dimension_numbers = #tpu.dot_dimension_numbers<[1], [0], [0], [1], [0, 0, 1, 1], [], []>} : vector<4x16xbf16>, vector<16x256xbf16>, vector<4x256xf32> -> vector<4x256xf32>
    %c0_4 = arith.constant 0 : index
    %c0_5 = arith.constant 0 : index
    %5 = vector.load %arg1[%c0_4, %c0_5] : memref<4x16xbf16, #tpu.memory_space<vmem>>, vector<4x16xbf16>
    %c1 = arith.constant 1 : index
    %c0_6 = arith.constant 0 : index
    %c0_7 = arith.constant 0 : index
    %6 = vector.load %arg0[%c1, %c0_6, %c0_7] : memref<2x16x256xf32, #tpu.memory_space<vmem>>, vector<1x16x256xf32>
    %7 = vector.shape_cast %6 : vector<1x16x256xf32> to vector<16x256xf32>
    %8 = arith.truncf %7 : vector<16x256xf32> to vector<16x256xbf16>
    %cst_8 = arith.constant dense<0.000000e+00> : vector<4x256xf32>
    %9 = tpu.matmul %5, %8, %cst_8 {dimension_numbers = #tpu.dot_dimension_numbers<[1], [0], [0], [1], [0, 0, 1, 1], [], []>} : vector<4x16xbf16>, vector<16x256xbf16>, vector<4x256xf32> -> vector<4x256xf32>
    %cst_9 = arith.constant 0.000000e+00 : f32
    %10 = vector.broadcast %cst_9 : f32 to vector<4x1xf32>
    %cst_10 = arith.constant 0.000000e+00 : f32
    %11 = vector.broadcast %cst_10 : f32 to vector<4x1xf32>
    %cst_11 = arith.constant dense<0.000000e+00> : vector<4xf32>
    %12 = vector.multi_reduction <add>, %4, %cst_11 [1] : vector<4x256xf32> to vector<4xf32>
    %13 = vector.shape_cast %12 : vector<4xf32> to vector<4x1xf32>
    %14 = arith.addf %10, %13 : vector<4x1xf32>
    %15 = arith.mulf %4, %4 : vector<4x256xf32>
    %cst_12 = arith.constant dense<0.000000e+00> : vector<4xf32>
    %16 = vector.multi_reduction <add>, %15, %cst_12 [1] : vector<4x256xf32> to vector<4xf32>
    %17 = vector.shape_cast %16 : vector<4xf32> to vector<4x1xf32>
    %18 = arith.addf %11, %17 : vector<4x1xf32>
    %cst_13 = arith.constant dense<0.000000e+00> : vector<4xf32>
    %19 = vector.multi_reduction <add>, %9, %cst_13 [1] : vector<4x256xf32> to vector<4xf32>
    %20 = vector.shape_cast %19 : vector<4xf32> to vector<4x1xf32>
    %21 = arith.addf %14, %20 : vector<4x1xf32>
    %22 = arith.mulf %9, %9 : vector<4x256xf32>
    %cst_14 = arith.constant dense<0.000000e+00> : vector<4xf32>
    %23 = vector.multi_reduction <add>, %22, %cst_14 [1] : vector<4x256xf32> to vector<4xf32>
    %24 = vector.shape_cast %23 : vector<4xf32> to vector<4x1xf32>
    %25 = arith.addf %18, %24 : vector<4x1xf32>
    %cst_15 = arith.constant 0.001953125 : f32
    %26 = vector.broadcast %cst_15 : f32 to vector<4x1xf32>
    %27 = arith.mulf %21, %26 : vector<4x1xf32>
    %cst_16 = arith.constant 0.001953125 : f32
    %28 = vector.broadcast %cst_16 : f32 to vector<4x1xf32>
    %29 = arith.mulf %25, %28 : vector<4x1xf32>
    %30 = arith.mulf %27, %27 : vector<4x1xf32>
    %31 = arith.subf %29, %30 : vector<4x1xf32>
    %cst_17 = arith.constant 9.99999974E-6 : f32
    %32 = vector.broadcast %cst_17 : f32 to vector<4x1xf32>
    %33 = arith.addf %31, %32 : vector<4x1xf32>
    %34 = math.rsqrt %33 : vector<4x1xf32>
    %c0_18 = arith.constant 0 : index
    %c0_19 = arith.constant 0 : index
    %35 = vector.load %arg4[%c0_18, %c0_19] : memref<4x1xf32, #tpu.memory_space<vmem>>, vector<4x1xf32>
    %36 = arith.mulf %34, %35 : vector<4x1xf32>
    %c0_20 = arith.constant 0 : index
    %c0_21 = arith.constant 0 : index
    %37 = vector.load %arg5[%c0_20, %c0_21] : memref<4x1xf32, #tpu.memory_space<vmem>>, vector<4x1xf32>
    %38 = arith.mulf %27, %36 : vector<4x1xf32>
    %39 = arith.subf %37, %38 : vector<4x1xf32>
    %40 = vector.broadcast %36 : vector<4x1xf32> to vector<4x256xf32>
    %41 = arith.mulf %4, %40 : vector<4x256xf32>
    %42 = vector.broadcast %39 : vector<4x1xf32> to vector<4x256xf32>
    %43 = arith.addf %41, %42 : vector<4x256xf32>
    %cst_22 = arith.constant 0.000000e+00 : f32
    %44 = vector.broadcast %cst_22 : f32 to vector<4x256xf32>
    %45 = arith.maximumf %43, %44 : vector<4x256xf32>
    %46 = vector.broadcast %36 : vector<4x1xf32> to vector<4x256xf32>
    %47 = arith.mulf %9, %46 : vector<4x256xf32>
    %48 = vector.broadcast %39 : vector<4x1xf32> to vector<4x256xf32>
    %49 = arith.addf %47, %48 : vector<4x256xf32>
    %cst_23 = arith.constant 0.000000e+00 : f32
    %50 = vector.broadcast %cst_23 : f32 to vector<4x256xf32>
    %51 = arith.maximumf %49, %50 : vector<4x256xf32>
    %52 = tpu.iota {dimensions = array<i32: 1>} : vector<1x256xi32>
    %c15_i32 = arith.constant 15 : i32
    %53 = vector.broadcast %c15_i32 : i32 to vector<1x256xi32>
    %54 = arith.andi %52, %53 : vector<1x256xi32>
    %c0_i32 = arith.constant 0 : i32
    %55 = vector.broadcast %c0_i32 : i32 to vector<1x256xi32>
    %56 = arith.cmpi sge, %52, %55 : vector<1x256xi32>
    %c16_i32 = arith.constant 16 : i32
    %57 = vector.broadcast %c16_i32 : i32 to vector<1x256xi32>
    %58 = arith.cmpi sge, %52, %57 : vector<1x256xi32>
    %59 = arith.andi %56, %58 : vector<1x256xi1>
    %c1_i32 = arith.constant 1 : i32
    %60 = vector.broadcast %c1_i32 : i32 to vector<1x256xi32>
    %61 = arith.cmpi sge, %54, %60 : vector<1x256xi32>
    %62 = arith.andi %59, %61 : vector<1x256xi1>
    %63 = arith.extui %62 : vector<1x256xi1> to vector<1x256xi32>
    %64 = arith.sitofp %63 : vector<1x256xi32> to vector<1x256xf32>
    %c0_i32_24 = arith.constant 0 : i32
    %65 = vector.broadcast %c0_i32_24 : i32 to vector<1x256xi32>
    %66 = arith.cmpi sge, %52, %65 : vector<1x256xi32>
    %c16_i32_25 = arith.constant 16 : i32
    %67 = vector.broadcast %c16_i32_25 : i32 to vector<1x256xi32>
    %68 = arith.cmpi sge, %52, %67 : vector<1x256xi32>
    %69 = arith.andi %66, %68 : vector<1x256xi1>
    %70 = arith.extui %69 : vector<1x256xi1> to vector<1x256xi32>
    %71 = arith.sitofp %70 : vector<1x256xi32> to vector<1x256xf32>
    %c0_i32_26 = arith.constant 0 : i32
    %72 = vector.broadcast %c0_i32_26 : i32 to vector<1x256xi32>
    %73 = arith.cmpi sge, %52, %72 : vector<1x256xi32>
    %c16_i32_27 = arith.constant 16 : i32
    %74 = vector.broadcast %c16_i32_27 : i32 to vector<1x256xi32>
    %75 = arith.cmpi sge, %52, %74 : vector<1x256xi32>
    %76 = arith.andi %73, %75 : vector<1x256xi1>
    %c14_i32 = arith.constant 14 : i32
    %77 = vector.broadcast %c14_i32 : i32 to vector<1x256xi32>
    %78 = arith.cmpi sle, %54, %77 : vector<1x256xi32>
    %79 = arith.andi %76, %78 : vector<1x256xi1>
    %80 = arith.extui %79 : vector<1x256xi1> to vector<1x256xi32>
    %81 = arith.sitofp %80 : vector<1x256xi32> to vector<1x256xf32>
    %c0_i32_28 = arith.constant 0 : i32
    %82 = vector.broadcast %c0_i32_28 : i32 to vector<1x256xi32>
    %83 = arith.cmpi sge, %52, %82 : vector<1x256xi32>
    %c1_i32_29 = arith.constant 1 : i32
    %84 = vector.broadcast %c1_i32_29 : i32 to vector<1x256xi32>
    %85 = arith.cmpi sge, %54, %84 : vector<1x256xi32>
    %86 = arith.andi %83, %85 : vector<1x256xi1>
    %87 = arith.extui %86 : vector<1x256xi1> to vector<1x256xi32>
    %88 = arith.sitofp %87 : vector<1x256xi32> to vector<1x256xf32>
    %c0_i32_30 = arith.constant 0 : i32
    %89 = vector.broadcast %c0_i32_30 : i32 to vector<1x256xi32>
    %90 = arith.cmpi sge, %52, %89 : vector<1x256xi32>
    %91 = arith.extui %90 : vector<1x256xi1> to vector<1x256xi32>
    %92 = arith.sitofp %91 : vector<1x256xi32> to vector<1x256xf32>
    %c0_i32_31 = arith.constant 0 : i32
    %93 = vector.broadcast %c0_i32_31 : i32 to vector<1x256xi32>
    %94 = arith.cmpi sge, %52, %93 : vector<1x256xi32>
    %c14_i32_32 = arith.constant 14 : i32
    %95 = vector.broadcast %c14_i32_32 : i32 to vector<1x256xi32>
    %96 = arith.cmpi sle, %54, %95 : vector<1x256xi32>
    %97 = arith.andi %94, %96 : vector<1x256xi1>
    %98 = arith.extui %97 : vector<1x256xi1> to vector<1x256xi32>
    %99 = arith.sitofp %98 : vector<1x256xi32> to vector<1x256xf32>
    %c0_i32_33 = arith.constant 0 : i32
    %100 = vector.broadcast %c0_i32_33 : i32 to vector<1x256xi32>
    %101 = arith.cmpi sge, %52, %100 : vector<1x256xi32>
    %c240_i32 = arith.constant 240 : i32
    %102 = vector.broadcast %c240_i32 : i32 to vector<1x256xi32>
    %103 = arith.cmpi slt, %52, %102 : vector<1x256xi32>
    %104 = arith.andi %101, %103 : vector<1x256xi1>
    %c1_i32_34 = arith.constant 1 : i32
    %105 = vector.broadcast %c1_i32_34 : i32 to vector<1x256xi32>
    %106 = arith.cmpi sge, %54, %105 : vector<1x256xi32>
    %107 = arith.andi %104, %106 : vector<1x256xi1>
    %108 = arith.extui %107 : vector<1x256xi1> to vector<1x256xi32>
    %109 = arith.sitofp %108 : vector<1x256xi32> to vector<1x256xf32>
    %c0_i32_35 = arith.constant 0 : i32
    %110 = vector.broadcast %c0_i32_35 : i32 to vector<1x256xi32>
    %111 = arith.cmpi sge, %52, %110 : vector<1x256xi32>
    %c240_i32_36 = arith.constant 240 : i32
    %112 = vector.broadcast %c240_i32_36 : i32 to vector<1x256xi32>
    %113 = arith.cmpi slt, %52, %112 : vector<1x256xi32>
    %114 = arith.andi %111, %113 : vector<1x256xi1>
    %115 = arith.extui %114 : vector<1x256xi1> to vector<1x256xi32>
    %116 = arith.sitofp %115 : vector<1x256xi32> to vector<1x256xf32>
    %c0_i32_37 = arith.constant 0 : i32
    %117 = vector.broadcast %c0_i32_37 : i32 to vector<1x256xi32>
    %118 = arith.cmpi sge, %52, %117 : vector<1x256xi32>
    %c240_i32_38 = arith.constant 240 : i32
    %119 = vector.broadcast %c240_i32_38 : i32 to vector<1x256xi32>
    %120 = arith.cmpi slt, %52, %119 : vector<1x256xi32>
    %121 = arith.andi %118, %120 : vector<1x256xi1>
    %c14_i32_39 = arith.constant 14 : i32
    %122 = vector.broadcast %c14_i32_39 : i32 to vector<1x256xi32>
    %123 = arith.cmpi sle, %54, %122 : vector<1x256xi32>
    %124 = arith.andi %121, %123 : vector<1x256xi1>
    %125 = arith.extui %124 : vector<1x256xi1> to vector<1x256xi32>
    %126 = arith.sitofp %125 : vector<1x256xi32> to vector<1x256xf32>
    %c17_i32 = arith.constant 17 : i32
    %127 = tpu.dynamic_rotate %45 by %c17_i32 dim 1 : vector<4x256xf32>, i32 -> vector<4x256xf32>
    %128 = vector.broadcast %64 : vector<1x256xf32> to vector<4x256xf32>
    %129 = arith.mulf %127, %128 : vector<4x256xf32>
    %c0_40 = arith.constant 0 : index
    %c0_41 = arith.constant 0 : index
    %130 = vector.load %arg11[%c0_40, %c0_41] : memref<36x256xf32, #tpu.memory_space<vmem>>, vector<4x256xf32>
    tpu.vector_store %arg11[%c0_40, %c0_41], %129 {strides = array<i32>} : memref<36x256xf32, #tpu.memory_space<vmem>>, vector<4x256xf32>,
    %c16_i32_42 = arith.constant 16 : i32
    %131 = tpu.dynamic_rotate %45 by %c16_i32_42 dim 1 : vector<4x256xf32>, i32 -> vector<4x256xf32>
    %132 = vector.broadcast %71 : vector<1x256xf32> to vector<4x256xf32>
    %133 = arith.mulf %131, %132 : vector<4x256xf32>
    %c4 = arith.constant 4 : index
    %c0_43 = arith.constant 0 : index
    %134 = vector.load %arg11[%c4, %c0_43] : memref<36x256xf32, #tpu.memory_space<vmem>>, vector<4x256xf32>
    tpu.vector_store %arg11[%c4, %c0_43], %133 {strides = array<i32>} : memref<36x256xf32, #tpu.memory_space<vmem>>, vector<4x256xf32>,
    %c15_i32_44 = arith.constant 15 : i32
    %135 = tpu.dynamic_rotate %45 by %c15_i32_44 dim 1 : vector<4x256xf32>, i32 -> vector<4x256xf32>
    %136 = vector.broadcast %81 : vector<1x256xf32> to vector<4x256xf32>
    %137 = arith.mulf %135, %136 : vector<4x256xf32>
    %c8 = arith.constant 8 : index
    %c0_45 = arith.constant 0 : index
    %138 = vector.load %arg11[%c8, %c0_45] : memref<36x256xf32, #tpu.memory_space<vmem>>, vector<4x256xf32>
    tpu.vector_store %arg11[%c8, %c0_45], %137 {strides = array<i32>} : memref<36x256xf32, #tpu.memory_space<vmem>>, vector<4x256xf32>,
    %c1_i32_46 = arith.constant 1 : i32
    %139 = tpu.dynamic_rotate %45 by %c1_i32_46 dim 1 : vector<4x256xf32>, i32 -> vector<4x256xf32>
    %140 = vector.broadcast %88 : vector<1x256xf32> to vector<4x256xf32>
    %141 = arith.mulf %139, %140 : vector<4x256xf32>
    %c12 = arith.constant 12 : index
    %c0_47 = arith.constant 0 : index
    %142 = vector.load %arg11[%c12, %c0_47] : memref<36x256xf32, #tpu.memory_space<vmem>>, vector<4x256xf32>
    tpu.vector_store %arg11[%c12, %c0_47], %141 {strides = array<i32>} : memref<36x256xf32, #tpu.memory_space<vmem>>, vector<4x256xf32>,
    %143 = vector.broadcast %92 : vector<1x256xf32> to vector<4x256xf32>
    %144 = arith.mulf %45, %143 : vector<4x256xf32>
    %c16 = arith.constant 16 : index
    %c0_48 = arith.constant 0 : index
    %145 = vector.load %arg11[%c16, %c0_48] : memref<36x256xf32, #tpu.memory_space<vmem>>, vector<4x256xf32>
    tpu.vector_store %arg11[%c16, %c0_48], %144 {strides = array<i32>} : memref<36x256xf32, #tpu.memory_space<vmem>>, vector<4x256xf32>,
    %c255_i32 = arith.constant 255 : i32
    %146 = tpu.dynamic_rotate %45 by %c255_i32 dim 1 : vector<4x256xf32>, i32 -> vector<4x256xf32>
    %147 = vector.broadcast %99 : vector<1x256xf32> to vector<4x256xf32>
    %148 = arith.mulf %146, %147 : vector<4x256xf32>
    %c20 = arith.constant 20 : index
    %c0_49 = arith.constant 0 : index
    %149 = vector.load %arg11[%c20, %c0_49] : memref<36x256xf32, #tpu.memory_space<vmem>>, vector<4x256xf32>
    tpu.vector_store %arg11[%c20, %c0_49], %148 {strides = array<i32>} : memref<36x256xf32, #tpu.memory_space<vmem>>, vector<4x256xf32>,
    %c241_i32 = arith.constant 241 : i32
    %150 = tpu.dynamic_rotate %45 by %c241_i32 dim 1 : vector<4x256xf32>, i32 -> vector<4x256xf32>
    %151 = vector.broadcast %109 : vector<1x256xf32> to vector<4x256xf32>
    %152 = arith.mulf %150, %151 : vector<4x256xf32>
    %c24 = arith.constant 24 : index
    %c0_50 = arith.constant 0 : index
    %153 = vector.load %arg11[%c24, %c0_50] : memref<36x256xf32, #tpu.memory_space<vmem>>, vector<4x256xf32>
    tpu.vector_store %arg11[%c24, %c0_50], %152 {strides = array<i32>} : memref<36x256xf32, #tpu.memory_space<vmem>>, vector<4x256xf32>,
    %c240_i32_51 = arith.constant 240 : i32
    %154 = tpu.dynamic_rotate %45 by %c240_i32_51 dim 1 : vector<4x256xf32>, i32 -> vector<4x256xf32>
    %155 = vector.broadcast %116 : vector<1x256xf32> to vector<4x256xf32>
    %156 = arith.mulf %154, %155 : vector<4x256xf32>
    %c28 = arith.constant 28 : index
    %c0_52 = arith.constant 0 : index
    %157 = vector.load %arg11[%c28, %c0_52] : memref<36x256xf32, #tpu.memory_space<vmem>>, vector<4x256xf32>
    tpu.vector_store %arg11[%c28, %c0_52], %156 {strides = array<i32>} : memref<36x256xf32, #tpu.memory_space<vmem>>, vector<4x256xf32>,
    %c239_i32 = arith.constant 239 : i32
    %158 = tpu.dynamic_rotate %45 by %c239_i32 dim 1 : vector<4x256xf32>, i32 -> vector<4x256xf32>
    %159 = vector.broadcast %126 : vector<1x256xf32> to vector<4x256xf32>
    %160 = arith.mulf %158, %159 : vector<4x256xf32>
    %c32 = arith.constant 32 : index
    %c0_53 = arith.constant 0 : index
    %161 = vector.load %arg11[%c32, %c0_53] : memref<36x256xf32, #tpu.memory_space<vmem>>, vector<4x256xf32>
    tpu.vector_store %arg11[%c32, %c0_53], %160 {strides = array<i32>} : memref<36x256xf32, #tpu.memory_space<vmem>>, vector<4x256xf32>,
    %c0_54 = arith.constant 0 : index
    %c0_55 = arith.constant 0 : index
    %162 = vector.load %arg2[%c0_54, %c0_55] : memref<4x36xbf16, #tpu.memory_space<vmem>>, vector<4x36xbf16>
    %c0_56 = arith.constant 0 : index
    %c0_57 = arith.constant 0 : index
    %163 = vector.load %arg11[%c0_56, %c0_57] : memref<36x256xf32, #tpu.memory_space<vmem>>, vector<36x256xf32>
    %164 = arith.truncf %163 : vector<36x256xf32> to vector<36x256xbf16>
    %cst_58 = arith.constant dense<0.000000e+00> : vector<4x256xf32>
    %165 = tpu.matmul %162, %164, %cst_58 {dimension_numbers = #tpu.dot_dimension_numbers<[1], [0], [0], [1], [0, 0, 1, 1], [], []>} : vector<4x36xbf16>, vector<36x256xbf16>, vector<4x256xf32> -> vector<4x256xf32>
    %c17_i32_59 = arith.constant 17 : i32
    %166 = tpu.dynamic_rotate %51 by %c17_i32_59 dim 1 : vector<4x256xf32>, i32 -> vector<4x256xf32>
    %167 = vector.broadcast %64 : vector<1x256xf32> to vector<4x256xf32>
    %168 = arith.mulf %166, %167 : vector<4x256xf32>
    %c0_60 = arith.constant 0 : index
    %c0_61 = arith.constant 0 : index
    %169 = vector.load %arg11[%c0_60, %c0_61] : memref<36x256xf32, #tpu.memory_space<vmem>>, vector<4x256xf32>
    tpu.vector_store %arg11[%c0_60, %c0_61], %168 {strides = array<i32>} : memref<36x256xf32, #tpu.memory_space<vmem>>, vector<4x256xf32>,
    %c16_i32_62 = arith.constant 16 : i32
    %170 = tpu.dynamic_rotate %51 by %c16_i32_62 dim 1 : vector<4x256xf32>, i32 -> vector<4x256xf32>
    %171 = vector.broadcast %71 : vector<1x256xf32> to vector<4x256xf32>
    %172 = arith.mulf %170, %171 : vector<4x256xf32>
    %c4_63 = arith.constant 4 : index
    %c0_64 = arith.constant 0 : index
    %173 = vector.load %arg11[%c4_63, %c0_64] : memref<36x256xf32, #tpu.memory_space<vmem>>, vector<4x256xf32>
    tpu.vector_store %arg11[%c4_63, %c0_64], %172 {strides = array<i32>} : memref<36x256xf32, #tpu.memory_space<vmem>>, vector<4x256xf32>,
    %c15_i32_65 = arith.constant 15 : i32
    %174 = tpu.dynamic_rotate %51 by %c15_i32_65 dim 1 : vector<4x256xf32>, i32 -> vector<4x256xf32>
    %175 = vector.broadcast %81 : vector<1x256xf32> to vector<4x256xf32>
    %176 = arith.mulf %174, %175 : vector<4x256xf32>
    %c8_66 = arith.constant 8 : index
    %c0_67 = arith.constant 0 : index
    %177 = vector.load %arg11[%c8_66, %c0_67] : memref<36x256xf32, #tpu.memory_space<vmem>>, vector<4x256xf32>
    tpu.vector_store %arg11[%c8_66, %c0_67], %176 {strides = array<i32>} : memref<36x256xf32, #tpu.memory_space<vmem>>, vector<4x256xf32>,
    %c1_i32_68 = arith.constant 1 : i32
    %178 = tpu.dynamic_rotate %51 by %c1_i32_68 dim 1 : vector<4x256xf32>, i32 -> vector<4x256xf32>
    %179 = vector.broadcast %88 : vector<1x256xf32> to vector<4x256xf32>
    %180 = arith.mulf %178, %179 : vector<4x256xf32>
    %c12_69 = arith.constant 12 : index
    %c0_70 = arith.constant 0 : index
    %181 = vector.load %arg11[%c12_69, %c0_70] : memref<36x256xf32, #tpu.memory_space<vmem>>, vector<4x256xf32>
    tpu.vector_store %arg11[%c12_69, %c0_70], %180 {strides = array<i32>} : memref<36x256xf32, #tpu.memory_space<vmem>>, vector<4x256xf32>,
    %182 = vector.broadcast %92 : vector<1x256xf32> to vector<4x256xf32>
    %183 = arith.mulf %51, %182 : vector<4x256xf32>
    %c16_71 = arith.constant 16 : index
    %c0_72 = arith.constant 0 : index
    %184 = vector.load %arg11[%c16_71, %c0_72] : memref<36x256xf32, #tpu.memory_space<vmem>>, vector<4x256xf32>
    tpu.vector_store %arg11[%c16_71, %c0_72], %183 {strides = array<i32>} : memref<36x256xf32, #tpu.memory_space<vmem>>, vector<4x256xf32>,
    %c255_i32_73 = arith.constant 255 : i32
    %185 = tpu.dynamic_rotate %51 by %c255_i32_73 dim 1 : vector<4x256xf32>, i32 -> vector<4x256xf32>
    %186 = vector.broadcast %99 : vector<1x256xf32> to vector<4x256xf32>
    %187 = arith.mulf %185, %186 : vector<4x256xf32>
    %c20_74 = arith.constant 20 : index
    %c0_75 = arith.constant 0 : index
    %188 = vector.load %arg11[%c20_74, %c0_75] : memref<36x256xf32, #tpu.memory_space<vmem>>, vector<4x256xf32>
    tpu.vector_store %arg11[%c20_74, %c0_75], %187 {strides = array<i32>} : memref<36x256xf32, #tpu.memory_space<vmem>>, vector<4x256xf32>,
    %c241_i32_76 = arith.constant 241 : i32
    %189 = tpu.dynamic_rotate %51 by %c241_i32_76 dim 1 : vector<4x256xf32>, i32 -> vector<4x256xf32>
    %190 = vector.broadcast %109 : vector<1x256xf32> to vector<4x256xf32>
    %191 = arith.mulf %189, %190 : vector<4x256xf32>
    %c24_77 = arith.constant 24 : index
    %c0_78 = arith.constant 0 : index
    %192 = vector.load %arg11[%c24_77, %c0_78] : memref<36x256xf32, #tpu.memory_space<vmem>>, vector<4x256xf32>
    tpu.vector_store %arg11[%c24_77, %c0_78], %191 {strides = array<i32>} : memref<36x256xf32, #tpu.memory_space<vmem>>, vector<4x256xf32>,
    %c240_i32_79 = arith.constant 240 : i32
    %193 = tpu.dynamic_rotate %51 by %c240_i32_79 dim 1 : vector<4x256xf32>, i32 -> vector<4x256xf32>
    %194 = vector.broadcast %116 : vector<1x256xf32> to vector<4x256xf32>
    %195 = arith.mulf %193, %194 : vector<4x256xf32>
    %c28_80 = arith.constant 28 : index
    %c0_81 = arith.constant 0 : index
    %196 = vector.load %arg11[%c28_80, %c0_81] : memref<36x256xf32, #tpu.memory_space<vmem>>, vector<4x256xf32>
    tpu.vector_store %arg11[%c28_80, %c0_81], %195 {strides = array<i32>} : memref<36x256xf32, #tpu.memory_space<vmem>>, vector<4x256xf32>,
    %c239_i32_82 = arith.constant 239 : i32
    %197 = tpu.dynamic_rotate %51 by %c239_i32_82 dim 1 : vector<4x256xf32>, i32 -> vector<4x256xf32>
    %198 = vector.broadcast %126 : vector<1x256xf32> to vector<4x256xf32>
    %199 = arith.mulf %197, %198 : vector<4x256xf32>
    %c32_83 = arith.constant 32 : index
    %c0_84 = arith.constant 0 : index
    %200 = vector.load %arg11[%c32_83, %c0_84] : memref<36x256xf32, #tpu.memory_space<vmem>>, vector<4x256xf32>
    tpu.vector_store %arg11[%c32_83, %c0_84], %199 {strides = array<i32>} : memref<36x256xf32, #tpu.memory_space<vmem>>, vector<4x256xf32>,
    %c0_85 = arith.constant 0 : index
    %c0_86 = arith.constant 0 : index
    %201 = vector.load %arg2[%c0_85, %c0_86] : memref<4x36xbf16, #tpu.memory_space<vmem>>, vector<4x36xbf16>
    %c0_87 = arith.constant 0 : index
    %c0_88 = arith.constant 0 : index
    %202 = vector.load %arg11[%c0_87, %c0_88] : memref<36x256xf32, #tpu.memory_space<vmem>>, vector<36x256xf32>
    %203 = arith.truncf %202 : vector<36x256xf32> to vector<36x256xbf16>
    %cst_89 = arith.constant dense<0.000000e+00> : vector<4x256xf32>
    %204 = tpu.matmul %201, %203, %cst_89 {dimension_numbers = #tpu.dot_dimension_numbers<[1], [0], [0], [1], [0, 0, 1, 1], [], []>} : vector<4x36xbf16>, vector<36x256xbf16>, vector<4x256xf32> -> vector<4x256xf32>
    %cst_90 = arith.constant 0.000000e+00 : f32
    %205 = vector.broadcast %cst_90 : f32 to vector<4x1xf32>
    %cst_91 = arith.constant 0.000000e+00 : f32
    %206 = vector.broadcast %cst_91 : f32 to vector<4x1xf32>
    %cst_92 = arith.constant dense<0.000000e+00> : vector<4xf32>
    %207 = vector.multi_reduction <add>, %165, %cst_92 [1] : vector<4x256xf32> to vector<4xf32>
    %208 = vector.shape_cast %207 : vector<4xf32> to vector<4x1xf32>
    %209 = arith.addf %205, %208 : vector<4x1xf32>
    %210 = arith.mulf %165, %165 : vector<4x256xf32>
    %cst_93 = arith.constant dense<0.000000e+00> : vector<4xf32>
    %211 = vector.multi_reduction <add>, %210, %cst_93 [1] : vector<4x256xf32> to vector<4xf32>
    %212 = vector.shape_cast %211 : vector<4xf32> to vector<4x1xf32>
    %213 = arith.addf %206, %212 : vector<4x1xf32>
    %cst_94 = arith.constant dense<0.000000e+00> : vector<4xf32>
    %214 = vector.multi_reduction <add>, %204, %cst_94 [1] : vector<4x256xf32> to vector<4xf32>
    %215 = vector.shape_cast %214 : vector<4xf32> to vector<4x1xf32>
    %216 = arith.addf %209, %215 : vector<4x1xf32>
    %217 = arith.mulf %204, %204 : vector<4x256xf32>
    %cst_95 = arith.constant dense<0.000000e+00> : vector<4xf32>
    %218 = vector.multi_reduction <add>, %217, %cst_95 [1] : vector<4x256xf32> to vector<4xf32>
    %219 = vector.shape_cast %218 : vector<4xf32> to vector<4x1xf32>
    %220 = arith.addf %213, %219 : vector<4x1xf32>
    %cst_96 = arith.constant 0.001953125 : f32
    %221 = vector.broadcast %cst_96 : f32 to vector<4x1xf32>
    %222 = arith.mulf %216, %221 : vector<4x1xf32>
    %cst_97 = arith.constant 0.001953125 : f32
    %223 = vector.broadcast %cst_97 : f32 to vector<4x1xf32>
    %224 = arith.mulf %220, %223 : vector<4x1xf32>
    %225 = arith.mulf %222, %222 : vector<4x1xf32>
    %226 = arith.subf %224, %225 : vector<4x1xf32>
    %cst_98 = arith.constant 9.99999974E-6 : f32
    %227 = vector.broadcast %cst_98 : f32 to vector<4x1xf32>
    %228 = arith.addf %226, %227 : vector<4x1xf32>
    %229 = math.rsqrt %228 : vector<4x1xf32>
    %c0_99 = arith.constant 0 : index
    %c0_100 = arith.constant 0 : index
    %230 = vector.load %arg6[%c0_99, %c0_100] : memref<4x1xf32, #tpu.memory_space<vmem>>, vector<4x1xf32>
    %231 = arith.mulf %229, %230 : vector<4x1xf32>
    %c0_101 = arith.constant 0 : index
    %c0_102 = arith.constant 0 : index
    %232 = vector.load %arg7[%c0_101, %c0_102] : memref<4x1xf32, #tpu.memory_space<vmem>>, vector<4x1xf32>
    %233 = arith.mulf %222, %231 : vector<4x1xf32>
    %234 = arith.subf %232, %233 : vector<4x1xf32>
    %235 = vector.broadcast %231 : vector<4x1xf32> to vector<4x256xf32>
    %236 = arith.mulf %165, %235 : vector<4x256xf32>
    %237 = vector.broadcast %234 : vector<4x1xf32> to vector<4x256xf32>
    %238 = arith.addf %236, %237 : vector<4x256xf32>
    %cst_103 = arith.constant 0.000000e+00 : f32
    %239 = vector.broadcast %cst_103 : f32 to vector<4x256xf32>
    %240 = arith.maximumf %238, %239 : vector<4x256xf32>
    %241 = vector.broadcast %231 : vector<4x1xf32> to vector<4x256xf32>
    %242 = arith.mulf %204, %241 : vector<4x256xf32>
    %243 = vector.broadcast %234 : vector<4x1xf32> to vector<4x256xf32>
    %244 = arith.addf %242, %243 : vector<4x256xf32>
    %cst_104 = arith.constant 0.000000e+00 : f32
    %245 = vector.broadcast %cst_104 : f32 to vector<4x256xf32>
    %246 = arith.maximumf %244, %245 : vector<4x256xf32>
    %c0_105 = arith.constant 0 : index
    %c0_106 = arith.constant 0 : index
    %247 = vector.load %arg3[%c0_105, %c0_106] : memref<16x4xbf16, #tpu.memory_space<vmem>>, vector<16x4xbf16>
    %248 = arith.truncf %240 : vector<4x256xf32> to vector<4x256xbf16>
    %cst_107 = arith.constant dense<0.000000e+00> : vector<16x256xf32>
    %249 = tpu.matmul %247, %248, %cst_107 {dimension_numbers = #tpu.dot_dimension_numbers<[1], [0], [0], [1], [0, 0, 1, 1], [], []>} : vector<16x4xbf16>, vector<4x256xbf16>, vector<16x256xf32> -> vector<16x256xf32>
    %c0_108 = arith.constant 0 : index
    %c0_109 = arith.constant 0 : index
    %250 = vector.load %arg3[%c0_108, %c0_109] : memref<16x4xbf16, #tpu.memory_space<vmem>>, vector<16x4xbf16>
    %251 = arith.truncf %246 : vector<4x256xf32> to vector<4x256xbf16>
    %cst_110 = arith.constant dense<0.000000e+00> : vector<16x256xf32>
    %252 = tpu.matmul %250, %251, %cst_110 {dimension_numbers = #tpu.dot_dimension_numbers<[1], [0], [0], [1], [0, 0, 1, 1], [], []>} : vector<16x4xbf16>, vector<4x256xbf16>, vector<16x256xf32> -> vector<16x256xf32>
    %cst_111 = arith.constant 0.000000e+00 : f32
    %253 = vector.broadcast %cst_111 : f32 to vector<16x1xf32>
    %cst_112 = arith.constant 0.000000e+00 : f32
    %254 = vector.broadcast %cst_112 : f32 to vector<16x1xf32>
    %cst_113 = arith.constant dense<0.000000e+00> : vector<16xf32>
    %255 = vector.multi_reduction <add>, %249, %cst_113 [1] : vector<16x256xf32> to vector<16xf32>
    %256 = vector.shape_cast %255 : vector<16xf32> to vector<16x1xf32>
    %257 = arith.addf %253, %256 : vector<16x1xf32>
    %258 = arith.mulf %249, %249 : vector<16x256xf32>
    %cst_114 = arith.constant dense<0.000000e+00> : vector<16xf32>
    %259 = vector.multi_reduction <add>, %258, %cst_114 [1] : vector<16x256xf32> to vector<16xf32>
    %260 = vector.shape_cast %259 : vector<16xf32> to vector<16x1xf32>
    %261 = arith.addf %254, %260 : vector<16x1xf32>
    %cst_115 = arith.constant dense<0.000000e+00> : vector<16xf32>
    %262 = vector.multi_reduction <add>, %252, %cst_115 [1] : vector<16x256xf32> to vector<16xf32>
    %263 = vector.shape_cast %262 : vector<16xf32> to vector<16x1xf32>
    %264 = arith.addf %257, %263 : vector<16x1xf32>
    %265 = arith.mulf %252, %252 : vector<16x256xf32>
    %cst_116 = arith.constant dense<0.000000e+00> : vector<16xf32>
    %266 = vector.multi_reduction <add>, %265, %cst_116 [1] : vector<16x256xf32> to vector<16xf32>
    %267 = vector.shape_cast %266 : vector<16xf32> to vector<16x1xf32>
    %268 = arith.addf %261, %267 : vector<16x1xf32>
    %cst_117 = arith.constant 0.001953125 : f32
    %269 = vector.broadcast %cst_117 : f32 to vector<16x1xf32>
    %270 = arith.mulf %264, %269 : vector<16x1xf32>
    %cst_118 = arith.constant 0.001953125 : f32
    %271 = vector.broadcast %cst_118 : f32 to vector<16x1xf32>
    %272 = arith.mulf %268, %271 : vector<16x1xf32>
    %273 = arith.mulf %270, %270 : vector<16x1xf32>
    %274 = arith.subf %272, %273 : vector<16x1xf32>
    %cst_119 = arith.constant 9.99999974E-6 : f32
    %275 = vector.broadcast %cst_119 : f32 to vector<16x1xf32>
    %276 = arith.addf %274, %275 : vector<16x1xf32>
    %277 = math.rsqrt %276 : vector<16x1xf32>
    %c0_120 = arith.constant 0 : index
    %c0_121 = arith.constant 0 : index
    %278 = vector.load %arg8[%c0_120, %c0_121] : memref<16x1xf32, #tpu.memory_space<vmem>>, vector<16x1xf32>
    %279 = arith.mulf %277, %278 : vector<16x1xf32>
    %c0_122 = arith.constant 0 : index
    %c0_123 = arith.constant 0 : index
    %280 = vector.load %arg9[%c0_122, %c0_123] : memref<16x1xf32, #tpu.memory_space<vmem>>, vector<16x1xf32>
    %281 = arith.mulf %270, %279 : vector<16x1xf32>
    %282 = arith.subf %280, %281 : vector<16x1xf32>
    %283 = vector.broadcast %279 : vector<16x1xf32> to vector<16x256xf32>
    %284 = arith.mulf %249, %283 : vector<16x256xf32>
    %285 = vector.broadcast %282 : vector<16x1xf32> to vector<16x256xf32>
    %286 = arith.addf %284, %285 : vector<16x256xf32>
    %c0_124 = arith.constant 0 : index
    %c0_125 = arith.constant 0 : index
    %c0_126 = arith.constant 0 : index
    %287 = vector.load %arg0[%c0_124, %c0_125, %c0_126] : memref<2x16x256xf32, #tpu.memory_space<vmem>>, vector<1x16x256xf32>
    %288 = vector.shape_cast %287 : vector<1x16x256xf32> to vector<16x256xf32>
    %289 = arith.addf %286, %288 : vector<16x256xf32>
    %cst_127 = arith.constant 0.000000e+00 : f32
    %290 = vector.broadcast %cst_127 : f32 to vector<16x256xf32>
    %291 = arith.maximumf %289, %290 : vector<16x256xf32>
    %c0_128 = arith.constant 0 : index
    %c0_129 = arith.constant 0 : index
    %c0_130 = arith.constant 0 : index
    %292 = vector.load %arg10[%c0_128, %c0_129, %c0_130] : memref<2x16x256xf32, #tpu.memory_space<vmem>>, vector<1x16x256xf32>
    %293 = vector.shape_cast %292 : vector<1x16x256xf32> to vector<16x256xf32>
    %294 = vector.shape_cast %291 : vector<16x256xf32> to vector<1x16x256xf32>
    tpu.vector_store %arg10[%c0_128, %c0_129, %c0_130], %294 {strides = array<i32>} : memref<2x16x256xf32, #tpu.memory_space<vmem>>, vector<1x16x256xf32>,
    %295 = vector.broadcast %279 : vector<16x1xf32> to vector<16x256xf32>
    %296 = arith.mulf %252, %295 : vector<16x256xf32>
    %297 = vector.broadcast %282 : vector<16x1xf32> to vector<16x256xf32>
    %298 = arith.addf %296, %297 : vector<16x256xf32>
    %c1_131 = arith.constant 1 : index
    %c0_132 = arith.constant 0 : index
    %c0_133 = arith.constant 0 : index
    %299 = vector.load %arg0[%c1_131, %c0_132, %c0_133] : memref<2x16x256xf32, #tpu.memory_space<vmem>>, vector<1x16x256xf32>
    %300 = vector.shape_cast %299 : vector<1x16x256xf32> to vector<16x256xf32>
    %301 = arith.addf %298, %300 : vector<16x256xf32>
    %cst_134 = arith.constant 0.000000e+00 : f32
    %302 = vector.broadcast %cst_134 : f32 to vector<16x256xf32>
    %303 = arith.maximumf %301, %302 : vector<16x256xf32>
    %c1_135 = arith.constant 1 : index
    %c0_136 = arith.constant 0 : index
    %c0_137 = arith.constant 0 : index
    %304 = vector.load %arg10[%c1_135, %c0_136, %c0_137] : memref<2x16x256xf32, #tpu.memory_space<vmem>>, vector<1x16x256xf32>
    %305 = vector.shape_cast %304 : vector<1x16x256xf32> to vector<16x256xf32>
    %306 = vector.shape_cast %303 : vector<16x256xf32> to vector<1x16x256xf32>
    tpu.vector_store %arg10[%c1_135, %c0_136, %c0_137], %306 {strides = array<i32>} : memref<2x16x256xf32, #tpu.memory_space<vmem>>, vector<1x16x256xf32>,
    return
  }
}

</mosaic_0001>

<bundles_post_ra>
// kernel: tpu_custom_call.1
= control target key start
LH: loop header
LB: loop body
LE: loop exit
PB: predicated region body
PF: predicated region fallthrough
CT: control target
= control target key end

     0   :  { %15 = vsyncpa [#allocation4], 0  ;;  %s1514_s0 = inlined_call_operand.hbm [shape: f32[2,16,256], index: 0, kind: input, shape index: {}]   ;;  %s1515_s1 = inlined_call_operand.vmem [shape: bf16[4,16], index: 1, kind: input, shape index: {}]   ;;  %s1516_s2 = inlined_call_operand.vmem [shape: bf16[4,36], index: 2, kind: input, shape index: {}]   ;;  %s1517_s3 = inlined_call_operand.vmem [shape: bf16[16,4], index: 3, kind: input, shape index: {}]   ;;  %s1518_s4 = inlined_call_operand.vmem [shape: f32[4,1], index: 4, kind: input, shape index: {}]   ;;  %s1519_s5 = inlined_call_operand.vmem [shape: f32[4,1], index: 5, kind: input, shape index: {}]   ;;  %s1520_s6 = inlined_call_operand.vmem [shape: f32[4,1], index: 6, kind: input, shape index: {}]   ;;  %s1521_s7 = inlined_call_operand.vmem [shape: f32[4,1], index: 7, kind: input, shape index: {}]   ;;  %s1522_s8 = inlined_call_operand.vmem [shape: f32[16,1], index: 8, kind: input, shape index: {}]   ;;  %s1523_s9 = inlined_call_operand.vmem [shape: f32[16,1], index: 9, kind: input, shape index: {}]   ;;  %s1524_s10 = inlined_call_operand.hbm [shape: f32[2,16,256], index: 10, kind: output, shape index: {}]  }
   0x1   :  { %16 = vsyncpa [#allocation5], 0  ;;  %s1063_s13 = smov [#allocation3]   ;;  %s1015_s17 = scalar_lea.hbm %s1514_s0, 1024 }
   0x2   :  { %s22_s14 = sshll.u32 %s1063_s13, 4  ;;  %p1016_p0 = scmp.ne.s32.totalorder %s1514_s0, %s1015_s17  ;;  %s23_s14 = int_to_ptr.vmem [resolvable:$true] %s22_s14 }
   0x3   :  { %p1019_p1 = scmp.lt.u32.totalorder %s1015_s17, %s1514_s0 }
   0x5   :  { %p1021_p2 = pnand %p1019_p1, %p1016_p0 }
   0x7   :  { %1024 = shalt.err (!%p1021_p2)
}
   0x8   :  { %s1025_s22 = scalar_lea.vmem %s23_s14, 1024  ;;  %p1030_p4 = scmp.lt.s32.totalorder %s23_s14, %s23_s14 }
   0x9   :  { %p1026_p3 = scmp.ne.s32.totalorder %s23_s14, %s1025_s22  ;;  %p1031_p5 = scmp.lt.s32.totalorder %s1025_s22, %s1025_s22 }
   0xb   :  { %p1032_p6 = por %p1031_p5, %p1030_p4 }
   0xd   :  { %p1033_p7 = pnand %p1032_p6, %p1026_p3 }
   0xf   :  { %1036 = shalt.err (!%p1033_p7)
}
  0x10   :  { %s1064_s23 = smov 256   ;;  %s1065_s24 = smov 16  }
  0x11   :  { %28 = dma.hbm_to_vmem [thread:$0]  %s1514_s0, 1024, %s23_s14, [#allocation4], %s1064_s23, %s1064_s23, %s1065_s24  }
  0x12   :  { %1059 = dma.done.wait [#allocation4], 1024  }
  0x13   :  { %1060 = vsyncadd [#allocation4], 4294966272  ;;  %v1066_v0 = vmov 0   ;;  %v53_v1 = vld [vmem:[#allocation3 + $0x8] sm:$0xff]  ;;  %v55_v2 = vld [vmem:[#allocation3 + $0x18] sm:$0xff]  ;;  %vm58_vm0 = vcmask 130048  }
  0x14   :  { %94 = vmatprep.mubr.bf16.mxu0 %v1066_v0  ;;  %142 = vmatprep.mubr.bf16.mxu1 %v1066_v0  ;;  %v52_v3 = vld [vmem:[#allocation3] sm:$0xff]  ;;  %v57_v4 = vpack.c.bf16 %v55_v2, %v53_v1  ;;  %v54_v5 = vld [vmem:[#allocation3 + $0x10] sm:$0xff]  ;;  %v105_v6 = vld [vmem:[#allocation3 + $0x28] sm:$0xff]  ;;  %vm151_vm1 = vcmask 1043456   ;;  %s1068_s11 = smov 1   ;;  %s1070_s12 = smov 112  }
  0x15   :  { %1000 = vset.pattern.permute.xlu0 %v1066_v0  ;;  %1001 = vset.pattern.permute.xlu1 %v1066_v0  ;;  %v107_v7 = vld [vmem:[#allocation3 + $0x38] sm:$0xff]  ;;  %v56_v8 = vpack.c.bf16 %v54_v5, %v52_v3  ;;  %v104_v10 = vld [vmem:[#allocation3 + $0x20] sm:$0xff]  ;;  %v106_v11 = vld [vmem:[#allocation3 + $0x30] sm:$0xff]  ;;  %s1071_s13 = smov 113   ;;  %s1072_s14 = smov 17  }
  0x16   :  { %v109_v9 = vpack.c.bf16 %v107_v7, %v105_v6  ;;  %62 = vmatprep.subr.bf16.mxu0 %v57_v4  ;;  %v108_v12 = vpack.c.bf16 %v106_v11, %v104_v10  ;;  %v51_v13 = vld [vmem:[%s1515_s1] sm:$0x3]  ;;  %s1073_s15 = smov 111   ;;  %v213_v6 = vlaneseq }
  0x17   :  { %63 = vmatpush1.bf16.msra.mxu0 %v56_v8  ;;  %v186_v49 = vld [vmem:[%s1518_s4] sm:$0xf]  ;;  %s1067_s4 = smov 15  }
  0x18   :  { %110 = vmatprep.subr.bf16.mxu1 %v109_v9  ;;  %v188_v52 = vld [vmem:[%s1519_s5] sm:$0xf]  ;;  %s1069_s5 = smov 127   ;;  %v1219_v7 = vand.u32 127, %v213_v6 }
  0x19   :  { %111 = vmatpush1.bf16.msra.mxu1 %v108_v12 }
  0x1a   :  { %962 = vmatmul.mubr.msk.bf16.vlgmr.msra.gmra.mrb[0].mxu0 %vm58_vm0, %v51_v13  ;;  %v1222_v8 = vadd.s32 128, %v1219_v7  ;;  %v216_v9 = vand.u32 15, %v1219_v7  ;;  %vm323_vm4 = vcmp.lt.s32.totalorder %v1219_v7, 1  ;;  %vm220_vm5 = vcmp.ge.s32.totalorder %v1219_v7, 16 }
  0x1b   :  { %456 = vmatprep.mubr.bf16.mxu0 %v1066_v0  ;;  %vm295_vm6 = vcmp.lt.s32.totalorder %v1219_v7, 16  ;;  %vm284_vm9 = vcmp.lt.s32.totalorder %v1219_v7, 17  ;;  %vm312_vm12 = vcmp.lt.s32.totalorder %v1219_v7, 15  ;;  %vm344_vm13 = vcmp.lt.s32.totalorder %v1219_v7, 127 }
  0x1c   :  { %963 = vmatmul.mubr.msk.bf16.vlgmr.msra.gmra.mrb[0].mxu1 %vm58_vm0, %v51_v13  ;;  %v217_v10 = vand.u32 15, %v1222_v8  ;;  %vm1226_vm2 = vcmp.ge.s32.totalorder %v216_v9, 1  ;;  %vm1267_vm8 = vcmp.le.s32.totalorder %v216_v9, 14  ;;  %vm261_vm14 = vcmp.lt.s32.totalorder %v1222_v8, 240 }
  0x1d   :  { %631 = vmatprep.mubr.bf16.mxu1 %v1066_v0  ;;  %vm226_vm7 = vmand %vm220_vm5, %vm1226_vm2  ;;  %vm372_vm15 = vcmp.lt.s32.totalorder %v1219_v7, 112 }
  0x1e   :  { %vm1230_vm3 = vcmp.ge.s32.totalorder %v217_v10, 1  ;;  %vm1275_vm10 = vcmp.le.s32.totalorder %v217_v10, 14  ;;  %vm238_vm11 = vmand %vm220_vm5, %vm1267_vm8 }
  0x1f   :  { %vm265_vm0 = vmand %vm261_vm14, %vm1230_vm3 }
  0xed   :  { %v96_v14 = vpop.f32.mrb[0].mxu0 }
  0xee   :  { %v98_v15 = vpop.f32.mrb[1].mxu0  ;;  %v152_v17 = vsel %vm151_vm1, %v96_v14, 0.0  ;;  %v158_v18 = vmul.f32 %v96_v14, %v96_v14 }
  0xef   :  { %v1155_v16 = vpop.f32.mrb[0].mxu1  ;;  %v100_v20 = vpop.f32.mrb[2].mxu0  ;;  %v153_v22 = vsel %vm151_vm1, %v98_v15, 0.0  ;;  %v159_v23 = vmul.f32 %v98_v15, %v98_v15 }
  0xf0   :  { %v172_v19 = vmul.f32 %v1155_v16, %v1155_v16  ;;  %v146_v21 = vpop.f32.mrb[1].mxu1  ;;  %v166_v24 = vsel %vm151_vm1, %v1155_v16, 0.0  ;;  %v101_v26 = vpop.f32.mrb[3].mxu0  ;;  %v154_v28 = vadd.f32 %v153_v22, %v152_v17  ;;  %v160_v29 = vsel %vm151_vm1, %v158_v18, 0.0 }
  0xf1   :  { %v173_v25 = vmul.f32 %v146_v21, %v146_v21  ;;  %v148_v27 = vpop.f32.mrb[2].mxu1  ;;  %v167_v30 = vsel %vm151_vm1, %v146_v21, 0.0  ;;  %v161_v32 = vsel %vm151_vm1, %v159_v23, 0.0 }
  0xf2   :  { %v149_v31 = vpop.f32.mrb[3].mxu1  ;;  %v168_v33 = vadd.f32 %v167_v30, %v166_v24  ;;  %v174_v34 = vsel %vm151_vm1, %v172_v19, 0.0  ;;  %155 = vadd.xlane.f32.xlu0 %v154_v28  ;;  %v162_v35 = vadd.f32 %v161_v32, %v160_v29 }
  0xf3   :  { %v175_v36 = vsel %vm151_vm1, %v173_v25, 0.0 }
  0xf4   :  { %v176_v37 = vadd.f32 %v175_v36, %v174_v34  ;;  %163 = vadd.xlane.f32.xlu1 %v162_v35 }
  0xf6   :  { %169 = vadd.xlane.f32.xlu0 %v168_v33 }
  0xf8   :  { %177 = vadd.xlane.f32.xlu1 %v176_v37 }
 0x17f   :  { %v156_v38 = vpop.xlane.xlu0 %155 }
 0x181   :  { %v164_v39 = vpop.xlane.xlu1 %163 }
 0x183   :  { %v170_v40 = vpop.xlane.xlu0 %169 }
 0x184   :  { %v171_v41 = vadd.f32 %v170_v40, %v156_v38 }
 0x185   :  { %v178_v42 = vpop.xlane.xlu1 %177 }
 0x186   :  { %v180_v43 = vmul.f32 0.001953125, %v171_v41  ;;  %v179_v44 = vadd.f32 %v178_v42, %v164_v39 }
 0x188   :  { %v182_v45 = vmul.f32 %v180_v43, %v180_v43  ;;  %v181_v46 = vmul.f32 0.001953125, %v179_v44 }
 0x18a   :  { %v183_v47 = vsub.f32 %v181_v46, %v182_v45 }
 0x18c   :  { %v184_v48 = vadd.f32 1e-05, %v183_v47 }
 0x18e   :  { %1003 = vrsqrt.f32 %v184_v48 }
 0x198   :  { %v1004_v50 = vpop.eup %1003 }
 0x199   :  { %v187_v51 = vmul.f32 %v1004_v50, %v186_v49 }
 0x19b   :  { %193 = vperm.xlu0 %1000, %v187_v51   ;;  %v189_v53 = vmul.f32 %v187_v51, %v180_v43 }
 0x19d   :  { %v190_v54 = vsub.f32 %v188_v52, %v189_v53 }
 0x19f   :  { %200 = vperm.xlu1 %1001, %v190_v54  }
 0x21a   :  { %v194_v55 = vpop.permute.xlu0 %193 }
 0x21b   :  { %v196_v56 = vmul.f32 %v194_v55, %v96_v14  ;;  %v197_v57 = vmul.f32 %v194_v55, %v98_v15  ;;  %v208_v63 = vmul.f32 %v194_v55, %v146_v21  ;;  %v207_v3 = vmul.f32 %v194_v55, %v1155_v16 }
 0x21c   :  { %v1074_v15 = vmov 0.0  }
 0x21d   :  { %v1238_v16 = vsel %vm1230_vm3, 1.0, %v1074_v15  ;;  %v1243_v17 = vsel %vm1226_vm2, 1.0, %v1074_v15  ;;  %v1256_v27 = vsel %vm220_vm5, 1.0, %v1074_v15  ;;  %v1273_v38 = vsel %vm226_vm7, 1.0, %v1074_v15  ;;  %vm275_vm3 = vmand %vm261_vm14, %vm1275_vm10 }
 0x21e   :  { %v201_v58 = vpop.permute.xlu1 %200  ;;  %v1291_v45 = vsel %vm238_vm11, 1.0, %v1074_v15  ;;  %v1296_v46 = vsel %vm1275_vm10, 1.0, %v1074_v15  ;;  %v1308_v53 = vsel %vm1267_vm8, 1.0, %v1074_v15  ;;  %vm361_vm2 = vcmp.lt.s32.totalorder %v1219_v7, 113 }
 0x21f   :  { %v203_v59 = vadd.f32 %v201_v58, %v196_v56  ;;  %v204_v60 = vadd.f32 %v201_v58, %v197_v57  ;;  %v210_v1 = vadd.f32 %v208_v63, %v201_v58  ;;  %v209_v4 = vadd.f32 %v207_v3, %v201_v58 }
 0x220   :  { %v1334_v10 = vsel %vm265_vm0, 1.0, %v1074_v15  ;;  %vm417_vm5 = vcmask 1041408  }
 0x221   :  { %v205_v61 = vmax.f32 %v203_v59, 0.0  ;;  %v206_v62 = vmax.f32 %v204_v60, 0.0  ;;  %v1182_v2 = vmax.f32 %v210_v1, 0.0  ;;  %v1198_v5 = vmax.f32 %v209_v4, 0.0 }
 0x222   :  { %v1321_v60 = vsel %vm261_vm14, 1.0, %v1074_v15 }
 0x223   :  { %338 = vst [vmem:[#allocation2 + $0x20] sm:$0xf] %v205_v61  ;;  %339 = vst [vmem:[#allocation2 + $0x28] sm:$0xf] %v206_v62  ;;  %310 = vrot.lane.b32.xlu0 %v206_v62, %s1067_s4  ;;  %319 = vrot.lane.b32.xlu1 %v205_v61, %s1068_s11 }
 0x227   :  { %342 = vrot.lane.b32.xlu0 %v206_v62, %s1069_s5  ;;  %321 = vrot.lane.b32.xlu1 %v206_v62, %s1068_s11 }
 0x22b   :  { %370 = vrot.lane.b32.xlu0 %v206_v62, %s1070_s12  ;;  %291 = vrot.lane.b32.xlu1 %v205_v61, %s1065_s24 }
 0x22f   :  { %359 = vrot.lane.b32.xlu0 %v206_v62, %s1071_s13  ;;  %293 = vrot.lane.b32.xlu1 %v206_v62, %s1065_s24 }
 0x233   :  { %280 = vrot.lane.b32.xlu1 %v205_v61, %s1072_s14  ;;  %503 = vrot.lane.b32.xlu0 %v1182_v2, %s1068_s11 }
 0x237   :  { %282 = vrot.lane.b32.xlu1 %v206_v62, %s1072_s14  ;;  %477 = vrot.lane.b32.xlu0 %v1182_v2, %s1065_s24 }
 0x23b   :  { %308 = vrot.lane.b32.xlu1 %v205_v61, %s1067_s4  ;;  %387 = vrot.lane.b32.xlu0 %v206_v62, %s1073_s15 }
 0x23f   :  { %340 = vrot.lane.b32.xlu1 %v205_v61, %s1069_s5  ;;  %467 = vrot.lane.b32.xlu0 %v1182_v2, %s1072_s14 }
 0x243   :  { %368 = vrot.lane.b32.xlu1 %v205_v61, %s1070_s12  ;;  %493 = vrot.lane.b32.xlu0 %v1182_v2, %s1067_s4 }
 0x247   :  { %357 = vrot.lane.b32.xlu1 %v205_v61, %s1071_s13  ;;  %523 = vrot.lane.b32.xlu0 %v1182_v2, %s1069_s5 }
 0x24b   :  { %549 = vrot.lane.b32.xlu0 %v1182_v2, %s1070_s12  ;;  %501 = vrot.lane.b32.xlu1 %v1198_v5, %s1068_s11 }
 0x24f   :  { %539 = vrot.lane.b32.xlu0 %v1182_v2, %s1071_s13  ;;  %475 = vrot.lane.b32.xlu1 %v1198_v5, %s1065_s24 }
 0x253   :  { %565 = vrot.lane.b32.xlu0 %v1182_v2, %s1073_s15  ;;  %385 = vrot.lane.b32.xlu1 %v205_v61, %s1073_s15 }
 0x257   :  { %465 = vrot.lane.b32.xlu1 %v1198_v5, %s1072_s14 }
 0x25b   :  { %491 = vrot.lane.b32.xlu1 %v1198_v5, %s1067_s4 }
 0x25f   :  { %521 = vrot.lane.b32.xlu1 %v1198_v5, %s1069_s5 }
 0x263   :  { %547 = vrot.lane.b32.xlu1 %v1198_v5, %s1070_s12 }
 0x267   :  { %537 = vrot.lane.b32.xlu1 %v1198_v5, %s1071_s13 }
 0x26b   :  { %563 = vrot.lane.b32.xlu1 %v1198_v5, %s1073_s15 }
 0x295   :  { %v311_v11 = vpop.permute.xlu0 %310  ;;  %v320_v12 = vpop.permute.xlu1 %319 }
 0x299   :  { %v322_v18 = vpop.permute.xlu1 %321  ;;  %v343_v21 = vpop.permute.xlu0 %342 }
 0x29a   :  { %v324_v19 = vsel %vm323_vm4, %v320_v12, %v322_v18  ;;  %v325_v20 = vsel %vm323_vm4, %v322_v18, %v320_v12 }
 0x29b   :  { %v326_v22 = vmul.f32 %v1243_v17, %v325_v20  ;;  %v327_v23 = vmul.f32 %v1238_v16, %v324_v19 }
 0x29d   :  { %v330_v24 = vrot.slane %v326_v22, 4  ;;  %v331_v25 = vrot.slane %v327_v23, 4  ;;  %v292_v26 = vpop.permute.xlu1 %291  ;;  %v371_v28 = vpop.permute.xlu0 %370 }
 0x29f   :  { %334 = vst [vmem:[#allocation2 + $0x10] sm:$0xf0] %v330_v24  ;;  %335 = vst [vmem:[#allocation2 + $0x18] sm:$0xf0] %v331_v25 }
 0x2a1   :  { %v294_v29 = vpop.permute.xlu1 %293  ;;  %v360_v37 = vpop.permute.xlu0 %359 }
 0x2a2   :  { %v296_v30 = vsel %vm295_vm6, %v292_v26, %v294_v29  ;;  %v297_v31 = vsel %vm295_vm6, %v294_v29, %v292_v26 }
 0x2a3   :  { %v298_v32 = vmul.f32 %v1256_v27, %v297_v31  ;;  %v303_v33 = vrot.slane %v296_v30, 4 }
 0x2a5   :  { %v302_v34 = vrot.slane %v298_v32, 4  ;;  %307 = vst [vmem:[#allocation2 + $0x8] sm:$0xf0] %v303_v33  ;;  %v281_v35 = vpop.permute.xlu1 %280  ;;  %v504_v47 = vpop.permute.xlu0 %503 }
 0x2a7   :  { %306 = vst [vmem:[#allocation2] sm:$0xf0] %v302_v34 }
 0x2a9   :  { %v283_v39 = vpop.permute.xlu1 %282  ;;  %v478_v57 = vpop.permute.xlu0 %477 }
 0x2aa   :  { %v285_v41 = vsel %vm284_vm9, %v281_v35, %v283_v39  ;;  %v286_v42 = vsel %vm284_vm9, %v283_v39, %v281_v35 }
 0x2ab   :  { %v287_v43 = vmul.f32 %v1273_v38, %v286_v42  ;;  %v288_v44 = vmul.f32 %v1238_v16, %v285_v41 }
 0x2ad   :  { %289 = vst [vmem:[#allocation2] sm:$0xf] %v287_v43  ;;  %290 = vst [vmem:[#allocation2 + $0x8] sm:$0xf] %v288_v44  ;;  %v309_v48 = vpop.permute.xlu1 %308  ;;  %v388_v14 = vpop.permute.xlu0 %387 }
 0x2ae   :  { %v313_v49 = vsel %vm312_vm12, %v309_v48, %v311_v11  ;;  %v314_v50 = vsel %vm312_vm12, %v311_v11, %v309_v48 }
 0x2af   :  { %v315_v51 = vmul.f32 %v1291_v45, %v314_v50  ;;  %v316_v52 = vmul.f32 %v1296_v46, %v313_v49 }
 0x2b1   :  { %317 = vst [vmem:[#allocation2 + $0x10] sm:$0xf] %v315_v51  ;;  %318 = vst [vmem:[#allocation2 + $0x18] sm:$0xf] %v316_v52  ;;  %v341_v54 = vpop.permute.xlu1 %340  ;;  %v468_v32 = vpop.permute.xlu0 %467 }
 0x2b2   :  { %v345_v55 = vsel %vm344_vm13, %v341_v54, %v343_v21  ;;  %v346_v56 = vsel %vm344_vm13, %v343_v21, %v341_v54 }
 0x2b3   :  { %v347_v58 = vmul.f32 %v1308_v53, %v345_v55  ;;  %v348_v59 = vmul.f32 %v1296_v46, %v346_v56 }
 0x2b4   :  { %v398_v9 = vld [vmem:[#allocation2 + $0x8] sm:$0xff]  ;;  %v397_v12 = vld [vmem:[#allocation2] sm:$0xff] }
 0x2b5   :  { %v351_v61 = vrot.slane %v347_v58, 4  ;;  %v352_v62 = vrot.slane %v348_v59, 4  ;;  %v369_v63 = vpop.permute.xlu1 %368  ;;  %v494_v8 = vpop.permute.xlu0 %493 }
 0x2b6   :  { %v373_v1 = vsel %vm372_vm15, %v369_v63, %v371_v28  ;;  %v374_v3 = vsel %vm372_vm15, %v371_v28, %v369_v63 }
 0x2b7   :  { %355 = vst [vmem:[#allocation2 + $0x20] sm:$0xf0] %v351_v61  ;;  %356 = vst [vmem:[#allocation2 + $0x28] sm:$0xf0] %v352_v62  ;;  %v376_v4 = vmul.f32 %v1321_v60, %v374_v3  ;;  %v379_v6 = vrot.slane %v373_v1, 4 }
 0x2b8   :  { %v400_v11 = vld [vmem:[#allocation2 + $0x18] sm:$0xff]  ;;  %v399_v13 = vld [vmem:[#allocation2 + $0x10] sm:$0xff] }
 0x2b9   :  { %v380_v18 = vrot.slane %v376_v4, 4  ;;  %383 = vst [vmem:[#allocation2 + $0x30] sm:$0xf0] %v379_v6  ;;  %v358_v19 = vpop.permute.xlu1 %357  ;;  %v408_v20 = vpack.c.bf16 %v400_v11, %v398_v9  ;;  %v407_v21 = vpack.c.bf16 %v399_v13, %v397_v12  ;;  %v524_v56 = vpop.permute.xlu0 %523 }
 0x2ba   :  { %v362_v22 = vsel %vm361_vm2, %v358_v19, %v360_v37  ;;  %v363_v23 = vsel %vm361_vm2, %v360_v37, %v358_v19 }
 0x2bb   :  { %384 = vst [vmem:[#allocation2 + $0x38] sm:$0xf0] %v380_v18  ;;  %v364_v24 = vmul.f32 %v1243_v17, %v362_v22  ;;  %v365_v25 = vmul.f32 %v1334_v10, %v363_v23  ;;  %424 = vmatprep.subr.bf16.mxu0 %v408_v20  ;;  %v396_v18 = vld [vmem:[%s1516_s2] sm:$0x3] }
 0x2bc   :  { %425 = vmatpush1.bf16.msra.mxu0 %v407_v21 }
 0x2bd   :  { %366 = vst [vmem:[#allocation2 + $0x30] sm:$0xf] %v364_v24  ;;  %367 = vst [vmem:[#allocation2 + $0x38] sm:$0xf] %v365_v25  ;;  %v502_v26 = vpop.permute.xlu1 %501  ;;  %v550_v6 = vpop.permute.xlu0 %549 }
 0x2be   :  { %v505_v28 = vsel %vm323_vm4, %v502_v26, %v504_v47  ;;  %v506_v29 = vsel %vm323_vm4, %v504_v47, %v502_v26  ;;  %v402_v30 = vld [vmem:[#allocation2 + $0x28] sm:$0xff]  ;;  %v401_v31 = vld [vmem:[#allocation2 + $0x20] sm:$0xff]  ;;  %vm389_vm4 = vcmp.lt.s32.totalorder %v1219_v7, 111 }
 0x2bf   :  { %v507_v33 = vmul.f32 %v1243_v17, %v506_v29  ;;  %v508_v34 = vmul.f32 %v1238_v16, %v505_v28  ;;  %520 = vst [vmem:[#allocation2 + $0x28] sm:$0xf] %v1182_v2  ;;  %519 = vst [vmem:[#allocation2 + $0x20] sm:$0xf] %v1198_v5  ;;  %v1361_v5 = vsel %vm275_vm3, 1.0, %v1074_v15 }
 0x2c1   :  { %v511_v35 = vrot.slane %v507_v33, 4  ;;  %v512_v36 = vrot.slane %v508_v34, 4  ;;  %v476_v37 = vpop.permute.xlu1 %475 }
 0x2c2   :  { %v479_v39 = vsel %vm295_vm6, %v476_v37, %v478_v57  ;;  %v480_v41 = vsel %vm295_vm6, %v478_v57, %v476_v37  ;;  %vm413_vm6 = vcmask 293888  }
 0x2c3   :  { %515 = vst [vmem:[#allocation2 + $0x10] sm:$0xf0] %v511_v35  ;;  %516 = vst [vmem:[#allocation2 + $0x18] sm:$0xf0] %v512_v36  ;;  %v481_v2 = vmul.f32 %v1256_v27, %v480_v41  ;;  %v486_v42 = vrot.slane %v479_v39, 4 }
 0x2c4   :  { %v404_v40 = vld [vmem:[#allocation2 + $0x38] sm:$0xff]  ;;  %v403_v43 = vld [vmem:[#allocation2 + $0x30] sm:$0xff] }
 0x2c5   :  { %v485_v44 = vrot.slane %v481_v2, 4  ;;  %490 = vst [vmem:[#allocation2 + $0x8] sm:$0xf0] %v486_v42  ;;  %v386_v47 = vpop.permute.xlu1 %385  ;;  %v410_v48 = vpack.c.bf16 %v404_v40, %v402_v30  ;;  %v409_v49 = vpack.c.bf16 %v403_v43, %v401_v31 }
 0x2c6   :  { %v390_v50 = vsel %vm389_vm4, %v386_v47, %v388_v14  ;;  %v391_v27 = vsel %vm389_vm4, %v388_v14, %v386_v47 }
 0x2c7   :  { %489 = vst [vmem:[#allocation2] sm:$0xf0] %v485_v44  ;;  %v392_v51 = vmul.f32 %v1308_v53, %v390_v50  ;;  %v393_v15 = vmul.f32 %v1361_v5, %v391_v27  ;;  %426 = vmatprep.subr.bf16.mxu0 %v410_v48 }
 0x2c8   :  { %427 = vmatpush1.bf16.msra.mxu0 %v409_v49 }
 0x2c9   :  { %394 = vst [vmem:[#allocation2 + $0x40] sm:$0xf] %v392_v51  ;;  %395 = vst [vmem:[#allocation2 + $0x48] sm:$0xf] %v393_v15  ;;  %v466_v52 = vpop.permute.xlu1 %465 }
 0x2ca   :  { %v469_v54 = vsel %vm284_vm9, %v466_v52, %v468_v32  ;;  %v470_v55 = vsel %vm284_vm9, %v468_v32, %v466_v52 }
 0x2cb   :  { %v471_v57 = vmul.f32 %v1273_v38, %v470_v55  ;;  %v472_v58 = vmul.f32 %v1238_v16, %v469_v54 }
 0x2cd   :  { %473 = vst [vmem:[#allocation2] sm:$0xf] %v471_v57  ;;  %474 = vst [vmem:[#allocation2 + $0x8] sm:$0xf] %v472_v58  ;;  %v492_v59 = vpop.permute.xlu1 %491 }
 0x2ce   :  { %v495_v61 = vsel %vm312_vm12, %v492_v59, %v494_v8  ;;  %v496_v62 = vsel %vm312_vm12, %v494_v8, %v492_v59 }
 0x2cf   :  { %v497_v63 = vmul.f32 %v1291_v45, %v496_v62  ;;  %v498_v1 = vmul.f32 %v1296_v46, %v495_v61 }
 0x2d0   :  { %v406_v3 = vld [vmem:[#allocation2 + $0x48] sm:$0xf]  ;;  %v405_v4 = vld [vmem:[#allocation2 + $0x40] sm:$0xf] }
 0x2d1   :  { %499 = vst [vmem:[#allocation2 + $0x10] sm:$0xf] %v497_v63  ;;  %500 = vst [vmem:[#allocation2 + $0x18] sm:$0xf] %v498_v1  ;;  %v522_v16 = vpop.permute.xlu1 %521  ;;  %v412_v38 = vpack.c.bf16 %v406_v3, %v406_v3  ;;  %v411_v9 = vpack.c.bf16 %v405_v4, %v405_v4 }
 0x2d2   :  { %v525_v11 = vsel %vm344_vm13, %v522_v16, %v524_v56  ;;  %v526_v12 = vsel %vm344_vm13, %v524_v56, %v522_v16 }
 0x2d3   :  { %v527_v13 = vmul.f32 %v1308_v53, %v525_v11  ;;  %v528_v45 = vmul.f32 %v1296_v46, %v526_v12  ;;  %978 = vmatprep.subr.msk.bf16.mxu0 %vm417_vm5, %v412_v38  ;;  %v419_v14 = vsel %vm417_vm5, %v411_v9, 0  ;;  %v540_v46 = vpop.permute.xlu0 %539 }
 0x2d4   :  { %429 = vmatpush1.bf16.msra.mxu0 %v419_v14  ;;  %v575_v26 = vld [vmem:[#allocation2 + $0x8] sm:$0xff]  ;;  %v574_v29 = vld [vmem:[#allocation2] sm:$0xff] }
 0x2d5   :  { %v531_v19 = vrot.slane %v527_v13, 4  ;;  %v532_v20 = vrot.slane %v528_v45, 4  ;;  %v548_v21 = vpop.permute.xlu1 %547 }
 0x2d6   :  { %v551_v22 = vsel %vm372_vm15, %v548_v21, %v550_v6  ;;  %v552_v23 = vsel %vm372_vm15, %v550_v6, %v548_v21 }
 0x2d7   :  { %535 = vst [vmem:[#allocation2 + $0x20] sm:$0xf0] %v531_v19  ;;  %536 = vst [vmem:[#allocation2 + $0x28] sm:$0xf0] %v532_v20  ;;  %v554_v24 = vmul.f32 %v1321_v60, %v552_v23  ;;  %v557_v25 = vrot.slane %v551_v22, 4  ;;  %979 = vmatmul.mubr.msk.bf16.vlgmr.msra.gmra.mrb[4].mxu0 %vm413_vm6, %v396_v18  ;;  %v566_v39 = vpop.permute.xlu0 %565 }
 0x2d8   :  { %v577_v28 = vld [vmem:[#allocation2 + $0x18] sm:$0xff]  ;;  %v576_v30 = vld [vmem:[#allocation2 + $0x10] sm:$0xff]  ;;  %752 = vmatprep.mubr.bf16.mxu0 %v1066_v0 }
 0x2d9   :  { %v558_v31 = vrot.slane %v554_v24, 4  ;;  %561 = vst [vmem:[#allocation2 + $0x30] sm:$0xf0] %v557_v25  ;;  %v538_v32 = vpop.permute.xlu1 %537  ;;  %v585_v33 = vpack.c.bf16 %v577_v28, %v575_v26  ;;  %v584_v34 = vpack.c.bf16 %v576_v30, %v574_v29  ;;  %v674_v28 = vld [vmem:[%s1520_s6] sm:$0xf] }
 0x2da   :  { %v541_v35 = vsel %vm361_vm2, %v538_v32, %v540_v46  ;;  %v542_v60 = vsel %vm361_vm2, %v540_v46, %v538_v32 }
 0x2db   :  { %562 = vst [vmem:[#allocation2 + $0x38] sm:$0xf0] %v558_v31  ;;  %v543_v36 = vmul.f32 %v1243_v17, %v541_v35  ;;  %v544_v37 = vmul.f32 %v1334_v10, %v542_v60  ;;  %599 = vmatprep.subr.bf16.mxu1 %v585_v33  ;;  %v676_v31 = vld [vmem:[%s1521_s7] sm:$0xf] }
 0x2dc   :  { %600 = vmatpush1.bf16.msra.mxu1 %v584_v34 }
 0x2dd   :  { %545 = vst [vmem:[#allocation2 + $0x30] sm:$0xf] %v543_v36  ;;  %546 = vst [vmem:[#allocation2 + $0x38] sm:$0xf] %v544_v37  ;;  %v564_v41 = vpop.permute.xlu1 %563 }
 0x2de   :  { %v567_v2 = vsel %vm389_vm4, %v564_v41, %v566_v39  ;;  %v568_v42 = vsel %vm389_vm4, %v566_v39, %v564_v41  ;;  %v579_v17 = vld [vmem:[#allocation2 + $0x28] sm:$0xff]  ;;  %v578_v8 = vld [vmem:[#allocation2 + $0x20] sm:$0xff] }
 0x2df   :  { %v569_v40 = vmul.f32 %v1308_v53, %v567_v2  ;;  %v570_v43 = vmul.f32 %v1361_v5, %v568_v42  ;;  %v573_v53 = vld [vmem:[%s1516_s2] sm:$0x3] }
 0x2e1   :  { %571 = vst [vmem:[#allocation2 + $0x40] sm:$0xf] %v569_v40  ;;  %572 = vst [vmem:[#allocation2 + $0x48] sm:$0xf] %v570_v43 }
 0x2e4   :  { %v581_v10 = vld [vmem:[#allocation2 + $0x38] sm:$0xff]  ;;  %v580_v44 = vld [vmem:[#allocation2 + $0x30] sm:$0xff] }
 0x2e5   :  { %v587_v47 = vpack.c.bf16 %v581_v10, %v579_v17  ;;  %v586_v48 = vpack.c.bf16 %v580_v44, %v578_v8 }
 0x2e7   :  { %601 = vmatprep.subr.bf16.mxu1 %v587_v47 }
 0x2e8   :  { %602 = vmatpush1.bf16.msra.mxu1 %v586_v48  ;;  %v583_v49 = vld [vmem:[#allocation2 + $0x48] sm:$0xf]  ;;  %v582_v50 = vld [vmem:[#allocation2 + $0x40] sm:$0xf] }
 0x2e9   :  { %v589_v27 = vpack.c.bf16 %v583_v49, %v583_v49  ;;  %v588_v51 = vpack.c.bf16 %v582_v50, %v582_v50 }
 0x2eb   :  { %980 = vmatprep.subr.msk.bf16.mxu1 %vm417_vm5, %v589_v27  ;;  %v594_v7 = vsel %vm417_vm5, %v588_v51, 0  ;;  %v1002_v51 = vld [vmem:[%s1517_s3] sm:$0xff]  }
 0x2ec   :  { %604 = vmatpush1.bf16.msra.mxu1 %v594_v7 }
 0x2ef   :  { %981 = vmatmul.mubr.msk.bf16.vlgmr.msra.gmra.mrb[4].mxu1 %vm413_vm6, %v573_v53 }
 0x2f0   :  { %803 = vmatprep.mubr.bf16.mxu1 %v1066_v0 }
 0x3aa   :  { %v458_v5 = vpop.f32.mrb[4].mxu0 }
 0x3ab   :  { %v646_v15 = vmul.f32 %v458_v5, %v458_v5  ;;  %v460_v52 = vpop.f32.mrb[5].mxu0  ;;  %v640_v54 = vsel %vm151_vm1, %v458_v5, 0.0 }
 0x3ac   :  { %v647_v55 = vmul.f32 %v460_v52, %v460_v52  ;;  %v462_v56 = vpop.f32.mrb[6].mxu0  ;;  %v641_v57 = vsel %vm151_vm1, %v460_v52, 0.0 }
 0x3ad   :  { %v463_v58 = vpop.f32.mrb[7].mxu0  ;;  %v642_v59 = vadd.f32 %v641_v57, %v640_v54  ;;  %v648_v61 = vsel %vm151_vm1, %v646_v15, 0.0 }
 0x3ae   :  { %v649_v62 = vsel %vm151_vm1, %v647_v55, 0.0 }
 0x3af   :  { %643 = vadd.xlane.f32.xlu1 %v642_v59  ;;  %v650_v63 = vadd.f32 %v649_v62, %v648_v61 }
 0x3c2   :  { %v633_v1 = vpop.f32.mrb[4].mxu1 }
 0x3c3   :  { %v660_v3 = vmul.f32 %v633_v1, %v633_v1  ;;  %v635_v0 = vpop.f32.mrb[5].mxu1  ;;  %v654_v4 = vsel %vm151_vm1, %v633_v1, 0.0 }
 0x3c4   :  { %v661_v6 = vmul.f32 %v635_v0, %v635_v0  ;;  %v637_v16 = vpop.f32.mrb[6].mxu1  ;;  %v655_v38 = vsel %vm151_vm1, %v635_v0, 0.0 }
 0x3c5   :  { %v638_v9 = vpop.f32.mrb[7].mxu1  ;;  %v656_v11 = vadd.f32 %v655_v38, %v654_v4  ;;  %v662_v12 = vsel %vm151_vm1, %v660_v3, 0.0 }
 0x3c6   :  { %v663_v13 = vsel %vm151_vm1, %v661_v6, 0.0  ;;  %vm710_vm1 = vcmask 31744  }
 0x3c7   :  { %657 = vadd.xlane.f32.xlu0 %v656_v11  ;;  %v664_v45 = vadd.f32 %v663_v13, %v662_v12 }
 0x3c9   :  { %665 = vadd.xlane.f32.xlu1 %v664_v45 }
 0x3cb   :  { %651 = vadd.xlane.f32.xlu0 %v650_v63 }
 0x43c   :  { %v644_v14 = vpop.xlane.xlu1 %643 }
 0x454   :  { %v658_v18 = vpop.xlane.xlu0 %657 }
 0x455   :  { %v659_v19 = vadd.f32 %v658_v18, %v644_v14 }
 0x456   :  { %v666_v21 = vpop.xlane.xlu1 %665 }
 0x457   :  { %v668_v20 = vmul.f32 0.001953125, %v659_v19 }
 0x458   :  { %v652_v22 = vpop.xlane.xlu0 %651 }
 0x459   :  { %v667_v23 = vadd.f32 %v666_v21, %v652_v22  ;;  %v670_v46 = vmul.f32 %v668_v20, %v668_v20 }
 0x45b   :  { %v669_v24 = vmul.f32 0.001953125, %v667_v23 }
 0x45d   :  { %v671_v25 = vsub.f32 %v669_v24, %v670_v46 }
 0x45f   :  { %v672_v26 = vadd.f32 1e-05, %v671_v25 }
 0x461   :  { %1005 = vrsqrt.f32 %v672_v26 }
 0x46b   :  { %v1006_v29 = vpop.eup %1005 }
 0x46c   :  { %v675_v30 = vmul.f32 %v1006_v29, %v674_v28 }
 0x46e   :  { %681 = vperm.xlu0 %1000, %v675_v30   ;;  %v677_v32 = vmul.f32 %v675_v30, %v668_v20 }
 0x470   :  { %v678_v33 = vsub.f32 %v676_v31, %v677_v32 }
 0x472   :  { %688 = vperm.xlu1 %1001, %v678_v33  }
 0x4ed   :  { %v682_v34 = vpop.permute.xlu0 %681 }
 0x4ee   :  { %v684_v35 = vmul.f32 %v682_v34, %v458_v5  ;;  %v685_v60 = vmul.f32 %v682_v34, %v460_v52  ;;  %v695_v36 = vmul.f32 %v682_v34, %v633_v1  ;;  %v696_v37 = vmul.f32 %v682_v34, %v635_v0 }
 0x4f1   :  { %v689_v39 = vpop.permute.xlu1 %688 }
 0x4f2   :  { %v691_v41 = vadd.f32 %v689_v39, %v684_v35  ;;  %v692_v2 = vadd.f32 %v689_v39, %v685_v60  ;;  %v697_v42 = vadd.f32 %v695_v36, %v689_v39  ;;  %v698_v40 = vadd.f32 %v696_v37, %v689_v39  ;;  %v867_v36 = vld [vmem:[%s1522_s8 + $0x8] sm:$0xff]  ;;  %v866_v37 = vld [vmem:[%s1522_s8] sm:$0xff]  ;;  %s1075_s8 = smov [#allocation6]  }
 0x4f4   :  { %v694_v43 = vmax.f32 %v692_v2, 0.0  ;;  %v700_v17 = vmax.f32 %v698_v40, 0.0  ;;  %v693_v10 = vmax.f32 %v691_v41, 0.0  ;;  %v699_v8 = vmax.f32 %v697_v42, 0.0  ;;  %v871_v40 = vld [vmem:[%s1523_s9 + $0x8] sm:$0xff] }
 0x4f6   :  { %v704_v44 = vpack.c.bf16 %v694_v43, %v694_v43  ;;  %v764_v47 = vpack.c.bf16 %v700_v17, %v700_v17  ;;  %v703_v48 = vpack.c.bf16 %v693_v10, %v693_v10  ;;  %v763_v49 = vpack.c.bf16 %v699_v8, %v699_v8  ;;  %v870_v17 = vld [vmem:[%s1523_s9] sm:$0xff]  ;;  %s950_s9 = sshll.u32 %s1075_s8, 4  ;;  %s951_s9 = int_to_ptr.vmem [resolvable:$true] %s950_s9 }
 0x4f7   :  { %s1037_s30 = scalar_lea.vmem %s951_s9, 1024  ;;  %p1042_p9 = scmp.lt.s32.totalorder %s951_s9, %s951_s9 }
 0x4f8   :  { %983 = vmatprep.subr.msk.bf16.mxu0 %vm417_vm5, %v704_v44  ;;  %985 = vmatprep.subr.msk.bf16.mxu1 %vm417_vm5, %v764_v47  ;;  %v715_v50 = vsel %vm417_vm5, %v703_v48, 0  ;;  %v766_v27 = vsel %vm417_vm5, %v763_v49, 0  ;;  %p1038_p8 = scmp.ne.s32.totalorder %s951_s9, %s1037_s30  ;;  %p1043_p10 = scmp.lt.s32.totalorder %s1037_s30, %s1037_s30 }
 0x4f9   :  { %721 = vmatpush1.bf16.msra.mxu0 %v715_v50  ;;  %772 = vmatpush1.bf16.msra.mxu1 %v766_v27 }
 0x4fa   :  { %p1044_p11 = por %p1043_p10, %p1042_p9 }
 0x4fc   :  { %984 = vmatmul.mubr.msk.bf16.vlgmr.msra.gmra.mrb[8].mxu0 %vm710_vm1, %v1002_v51  ;;  %986 = vmatmul.mubr.msk.bf16.vlgmr.msra.gmra.mrb[8].mxu1 %vm710_vm1, %v1002_v51  ;;  %p1045_p12 = pnand %p1044_p11, %p1038_p8 }
 0x5cf   :  { %v1439_v7 = vpop.f32.mrb[8].mxu0  ;;  %v1441_v53 = vpop.f32.mrb[8].mxu1 }
 0x5d0   :  { %v1443_v5 = vpop.f32.mrb[9].mxu0  ;;  %v1445_v15 = vpop.f32.mrb[9].mxu1  ;;  %v822_v52 = vmul.f32 %v1439_v7, %v1439_v7  ;;  %v842_v54 = vmul.f32 %v1441_v53, %v1441_v53 }
 0x5d1   :  { %v834_v55 = vadd.f32 %v1445_v15, %v1441_v53  ;;  %v1453_v56 = vpop.f32.mrb[10].mxu1  ;;  %v814_v57 = vadd.f32 %v1443_v5, %v1439_v7  ;;  %v1457_v58 = vpop.f32.mrb[10].mxu0  ;;  %v823_v59 = vmul.f32 %v1443_v5, %v1443_v5  ;;  %v843_v61 = vmul.f32 %v1445_v15, %v1445_v15 }
 0x5d2   :  { %v1463_v62 = vpop.f32.mrb[11].mxu0  ;;  %v1465_v63 = vpop.f32.mrb[11].mxu1  ;;  %v824_v1 = vmul.f32 %v1457_v58, %v1457_v58  ;;  %v844_v3 = vmul.f32 %v1453_v56, %v1453_v56 }
 0x5d3   :  { %835 = vadd.xlane.f32.xlu0 %v834_v55  ;;  %815 = vadd.xlane.f32.xlu1 %v814_v57  ;;  %v825_v0 = vmul.f32 %v1463_v62, %v1463_v62  ;;  %v845_v4 = vmul.f32 %v1465_v63, %v1465_v63  ;;  %v837_v6 = vadd.f32 %v1465_v63, %v1453_v56  ;;  %v904_v57 = vld [vmem:[#allocation3] sm:$0xff] }
 0x5d4   :  { %v817_v16 = vadd.f32 %v1463_v62, %v1457_v58  ;;  %v826_v38 = vadd.f32 %v823_v59, %v822_v52  ;;  %v846_v9 = vadd.f32 %v843_v61, %v842_v54 }
 0x5d5   :  { %v829_v11 = vadd.f32 %v825_v0, %v824_v1  ;;  %v849_v12 = vadd.f32 %v845_v4, %v844_v3 }
 0x5d7   :  { %838 = vadd.xlane.f32.xlu1 %v837_v6  ;;  %818 = vadd.xlane.f32.xlu0 %v817_v16  ;;  %v928_v6 = vld [vmem:[#allocation3 + $0x20] sm:$0xff] }
 0x5db   :  { %830 = vadd.xlane.f32.xlu1 %v829_v11  ;;  %827 = vadd.xlane.f32.xlu0 %v826_v38 }
 0x5df   :  { %850 = vadd.xlane.f32.xlu1 %v849_v12  ;;  %847 = vadd.xlane.f32.xlu0 %v846_v9 }
 0x660   :  { %v836_v13 = vpop.xlane.xlu0 %835  ;;  %v816_v45 = vpop.xlane.xlu1 %815 }
 0x661   :  { %v840_v19 = vadd.f32 %v836_v13, %v816_v45  ;;  %v1013_v13 = vld [vmem:[#allocation3 + $0x30] sm:$0xff]  ;;  %v1014_v45 = vld [vmem:[#allocation3 + $0x38] sm:$0xff] }
 0x663   :  { %v854_v23 = vmul.f32 0.001953125, %v840_v19 }
 0x664   :  { %v839_v14 = vpop.xlane.xlu1 %838  ;;  %v819_v18 = vpop.xlane.xlu0 %818 }
 0x665   :  { %v841_v20 = vadd.f32 %v839_v14, %v819_v18  ;;  %v858_v29 = vmul.f32 %v854_v23, %v854_v23 }
 0x667   :  { %v855_v46 = vmul.f32 0.001953125, %v841_v20 }
 0x668   :  { %v831_v21 = vpop.xlane.xlu1 %830  ;;  %v828_v22 = vpop.xlane.xlu0 %827 }
 0x669   :  { %v859_v30 = vmul.f32 %v855_v46, %v855_v46 }
 0x66c   :  { %v851_v24 = vpop.xlane.xlu1 %850  ;;  %v848_v25 = vpop.xlane.xlu0 %847 }
 0x66d   :  { %v853_v26 = vadd.f32 %v851_v24, %v831_v21  ;;  %v852_v28 = vadd.f32 %v848_v25, %v828_v22 }
 0x66f   :  { %v857_v31 = vmul.f32 0.001953125, %v853_v26  ;;  %v856_v32 = vmul.f32 0.001953125, %v852_v28 }
 0x671   :  { %v861_v33 = vsub.f32 %v857_v31, %v859_v30  ;;  %v860_v34 = vsub.f32 %v856_v32, %v858_v29 }
 0x673   :  { %v863_v35 = vadd.f32 1e-05, %v861_v33  ;;  %v862_v60 = vadd.f32 1e-05, %v860_v34 }
 0x675   :  { %1007 = vrsqrt.f32 %v863_v35 }
 0x676   :  { %1009 = vrsqrt.f32 %v862_v60 }
 0x67f   :  { %v1008_v39 = vpop.eup %1007 }
 0x680   :  { %v1010_v41 = vpop.eup %1009  ;;  %v869_v2 = vmul.f32 %v1008_v39, %v867_v36 }
 0x681   :  { %v868_v42 = vmul.f32 %v1010_v41, %v866_v37 }
 0x682   :  { %883 = vperm.xlu1 %1001, %v869_v2   ;;  %v873_v43 = vmul.f32 %v869_v2, %v855_v46 }
 0x683   :  { %878 = vperm.xlu0 %1000, %v868_v42   ;;  %v872_v10 = vmul.f32 %v868_v42, %v854_v23 }
 0x684   :  { %v875_v8 = vsub.f32 %v871_v40, %v873_v43 }
 0x685   :  { %v874_v44 = vsub.f32 %v870_v17, %v872_v10 }
 0x687   :  { %897 = vperm.xlu0 %1000, %v875_v8   ;;  %892 = vperm.xlu1 %1001, %v874_v44  }
 0x701   :  { %v884_v47 = vpop.permute.xlu1 %883 }
 0x702   :  { %v879_v48 = vpop.permute.xlu0 %878  ;;  %v888_v49 = vmul.f32 %v884_v47, %v1457_v58  ;;  %v889_v50 = vmul.f32 %v884_v47, %v1463_v62  ;;  %v922_v27 = vmul.f32 %v884_v47, %v1453_v56  ;;  %v923_v51 = vmul.f32 %v884_v47, %v1465_v63  ;;  %v905_v62 = vld [vmem:[#allocation3 + $0x8] sm:$0xff] }
 0x703   :  { %v886_v54 = vmul.f32 %v879_v48, %v1439_v7  ;;  %v887_v55 = vmul.f32 %v879_v48, %v1443_v5  ;;  %v920_v59 = vmul.f32 %v879_v48, %v1441_v53  ;;  %v921_v61 = vmul.f32 %v879_v48, %v1445_v15  ;;  %v929_v56 = vld [vmem:[#allocation3 + $0x28] sm:$0xff]  ;;  %v1011_v7 = vld [vmem:[#allocation3 + $0x10] sm:$0xff]  ;;  %v1012_v5 = vld [vmem:[#allocation3 + $0x18] sm:$0xff] }
 0x706   :  { %v898_v52 = vpop.permute.xlu0 %897  ;;  %v893_v1 = vpop.permute.xlu1 %892 }
 0x707   :  { %v902_v3 = vadd.f32 %v898_v52, %v888_v49  ;;  %v903_v0 = vadd.f32 %v898_v52, %v889_v50  ;;  %v926_v58 = vadd.f32 %v922_v27, %v898_v52  ;;  %v927_v4 = vadd.f32 %v923_v51, %v898_v52 }
 0x708   :  { %v900_v16 = vadd.f32 %v893_v1, %v886_v54  ;;  %v901_v63 = vadd.f32 %v893_v1, %v887_v55  ;;  %v924_v38 = vadd.f32 %v920_v59, %v893_v1  ;;  %v925_v9 = vadd.f32 %v921_v61, %v893_v1 }
 0x709   :  { %v910_v11 = vadd.f32 %v1011_v7, %v902_v3  ;;  %v911_v12 = vadd.f32 %v1012_v5, %v903_v0  ;;  %v934_v53 = vadd.f32 %v1013_v13, %v926_v58  ;;  %v935_v15 = vadd.f32 %v1014_v45, %v927_v4 }
 0x70a   :  { %v908_v14 = vadd.f32 %v904_v57, %v900_v16  ;;  %v909_v18 = vadd.f32 %v905_v62, %v901_v63  ;;  %v932_v19 = vadd.f32 %v928_v6, %v924_v38  ;;  %v933_v20 = vadd.f32 %v929_v56, %v925_v9 }
 0x70b   :  { %v914_v21 = vmax.f32 %v910_v11, 0.0  ;;  %v915_v22 = vmax.f32 %v911_v12, 0.0  ;;  %v938_v23 = vmax.f32 %v934_v53, 0.0  ;;  %v939_v46 = vmax.f32 %v935_v15, 0.0 }
 0x70c   :  { %v912_v24 = vmax.f32 %v908_v14, 0.0  ;;  %v913_v25 = vmax.f32 %v909_v18, 0.0  ;;  %v936_v26 = vmax.f32 %v932_v19, 0.0  ;;  %v937_v28 = vmax.f32 %v933_v20, 0.0 }
 0x70d   :  { %918 = vst [vmem:[#allocation6 + $0x10] sm:$0xff] %v914_v21  ;;  %919 = vst [vmem:[#allocation6 + $0x18] sm:$0xff] %v915_v22 }
 0x70e   :  { %943 = vst [vmem:[#allocation6 + $0x30] sm:$0xff] %v938_v23  ;;  %944 = vst [vmem:[#allocation6 + $0x38] sm:$0xff] %v939_v46 }
 0x70f   :  { %916 = vst [vmem:[#allocation6] sm:$0xff] %v912_v24  ;;  %917 = vst [vmem:[#allocation6 + $0x8] sm:$0xff] %v913_v25 }
 0x710   :  { %941 = vst [vmem:[#allocation6 + $0x20] sm:$0xff] %v936_v26  ;;  %942 = vst [vmem:[#allocation6 + $0x28] sm:$0xff] %v937_v28 }
 0x711   :  { %1048 = shalt.err (!%p1045_p12)
}
 0x712   :  { %s1049_s5 = scalar_lea.hbm %s1524_s10, 1024 }
 0x713   :  { %p1050_p13 = scmp.ne.s32.totalorder %s1524_s10, %s1049_s5  ;;  %p1053_p0 = scmp.lt.u32.totalorder %s1049_s5, %s1524_s10 }
 0x715   :  { %p1055_p1 = pnand %p1053_p0, %p1050_p13 }
 0x717   :  { %1058 = shalt.err (!%p1055_p1)
}
 0x718   :  { %956 = dma.vmem_to_hbm [thread:$0]  %s951_s9, 1024, %s1524_s10, [#allocation5], %s1064_s23, %s1064_s23, %s1065_s24  }
 0x719   :  { %1061 = dma.done.wait [#allocation5], 1024  }
 0x71a   :  { %1062 = vsyncadd [#allocation5], 4294966272 }
 0x71b   :  { %960 = vsyncpa [#allocation4], 1 }
 0x71c   :  { %961 = vsyncpa [#allocation5], 1 }

</bundles_post_ra>
